<compile_context>
chip_gen: v5e
topology: v5e:2x2
jax: 0.10.0
libtpu: 0.0.40
codegen_flags: <defaults>
</compile_context>

<pallas_src>
import jax
import jax.numpy as jnp
from jax import lax
from jax.experimental import pallas as pl
from jax.experimental.pallas import tpu as pltpu

# MXU operand dtype (accumulation is always f32).  bf16 = native MXU rate on v5e/v6e/v7x;
# set to jnp.float32 for bit-tight numerical checks.
MXU_DTYPE = jnp.bfloat16
# Final output dtype (use jnp.bfloat16 in production to halve the output write).
OUT_DTYPE = jnp.float32
BN_EPS = 1e-5


# ------------------------------ fused SESAC3 kernel ------------------------------
def make_sesac3_kernel(Himg, Wimg, mxu_dtype):
    HW = Himg * Wimg

    def kernel(x_ref, colrow_ref,
               wc1_ref, sc1_ref, bc1_ref,
               wc2_ref, sc2_ref, bc2_ref,
               wb1_ref, sb1_ref, bb1_ref,
               wb2_ref, sb2_ref, bb2_ref,
               wc3_ref, sc3_ref, bc3_ref,
               wf1_ref, wf2_ref, wsa_ref,
               o_ref):
        n_btl = wb1_ref.shape[0]

        def mxu(w, a):
            return jnp.dot(w.astype(mxu_dtype), a.astype(mxu_dtype),
                           preferred_element_type=jnp.float32)

        def silu(v):
            return v * jax.nn.sigmoid(v)

        # Edge-validity masks as (1, HW) rows (broadcast over channel sublanes).
        # col/row are passed in (tiny f32 operand) instead of in-kernel iota//% to avoid
        # relying on vector integer div/mod lowering; comparisons are all that's needed.
        col = colrow_ref[0:1, :]
        row = colrow_ref[1:2, :]
        not_l = col >= 1.0
        not_r = col <= float(Wimg - 2)
        not_t = row >= 1.0
        not_b = row <= float(Himg - 2)

        def shift(a, s):
            # out[:, j] = a[:, (j + s) % HW] -- lane rotation of the VMEM-resident value
            # (wrapped lanes are always masked by the caller).  Lowers to lane slices /
            # rotates on the XLU; equivalent to pltpu.roll(a, (-s) % HW, axis=1).
            k = s % HW
            if k == 0:
                return a
            return jnp.concatenate([a[:, k:], a[:, :k]], axis=1)

        def taps3x3(a):
            # The 9 zero-padded 3x3-neighborhood views of a (C, H*W) map, tap = kh*3 + kw.
            wins = []
            for dh, rmask in ((-1, not_t), (0, None), (1, not_b)):
                base = a if dh == 0 else jnp.where(rmask, shift(a, dh * Wimg), 0.0)
                for dw, cmask in ((-1, not_l), (0, None), (1, not_r)):
                    wins.append(base if dw == 0
                                else jnp.where(cmask, shift(base, dw), 0.0))
            return wins

        x = x_ref[...].astype(jnp.float32)                                   # (C1, HW)

        # ---- cv1 branch (1x1 conv + folded BN + SiLU) ----
        t = silu(mxu(wc1_ref[...], x) * sc1_ref[...] + bc1_ref[...])         # (Cm, HW)

        # ---- n x Bottleneck(c_, c_, e=1.0) with shortcut ----
        for i in range(n_btl):
            a = silu(mxu(wb1_ref[i], t) * sb1_ref[i] + bb1_ref[i])           # (Cm, HW)
            patches = jnp.concatenate(taps3x3(a), axis=0)                    # (9*Cm, HW)
            c = mxu(wb2_ref[i], patches) * sb2_ref[i] + bb2_ref[i]           # one K=9*Cm matmul
            t = t + silu(c)

        # ---- cv2 branch ----
        b2 = silu(mxu(wc2_ref[...], x) * sc2_ref[...] + bc2_ref[...])        # (Cm, HW)

        # ---- cv3 on the concat [t, b2]: single K=2*Cm matmul ----
        y = silu(mxu(wc3_ref[...], jnp.concatenate([t, b2], axis=0))
                 * sc3_ref[...] + bc3_ref[...])                              # (C2, HW)

        # ---- SE channel attention, fully fused: y never leaves VMEM ----
        pooled = jnp.sum(y, axis=1, keepdims=True) * (1.0 / HW)              # (C2, 1)
        h1 = jnp.maximum(
            jnp.dot(wf1_ref[...], pooled, preferred_element_type=jnp.float32), 0.0)
        ca = jax.nn.sigmoid(
            jnp.dot(wf2_ref[...], h1, preferred_element_type=jnp.float32))   # (C2, 1)
        out1 = y * ca

        # ---- spatial attention: lane-dense (1, HW) stats, 9 scalar-weighted taps ----
        ch_mean = jnp.mean(out1, axis=0, keepdims=True)                      # (1, HW)
        ch_max = jnp.max(out1, axis=0, keepdims=True)                        # (1, HW)
        mean_taps = taps3x3(ch_mean)
        max_taps = taps3x3(ch_max)
        s = mean_taps[0] * wsa_ref[0] + max_taps[0] * wsa_ref[1]
        for k in range(1, 9):
            s = s + mean_taps[k] * wsa_ref[2 * k] + max_taps[k] * wsa_ref[2 * k + 1]

        o_ref[...] = (out1 * jax.nn.sigmoid(s)).astype(o_ref.dtype)

    return kernel


# ------------------------------------ wrapper ------------------------------------
def sesac3_pallas(x_nchw, p):
    """SESAC3 forward.  x_nchw: (N, C1, H, W) -> (N, C2, H, W)."""
    N, C1, H, W = x_nchw.shape
    HW = H * W
    C2 = p["w_cv3"].shape[0]

    # NCHW is already channel-major: flattening (H, W) -> HW is free (no relayout),
    # so no wrapper-side transpose is needed on either side of the kernel.
    x = x_nchw.reshape(N, C1, HW).astype(jnp.float32)

    ar = jnp.arange(HW, dtype=jnp.int32)
    colrow = jnp.stack([ar % W, ar // W]).astype(jnp.float32)                # (2, HW)

    c2 = lambda n: (0, 0)
    c3 = lambda n: (0, 0, 0)

    out = pl.pallas_call(
        make_sesac3_kernel(H, W, MXU_DTYPE),
        out_shape=jax.ShapeDtypeStruct((N, C2, HW), OUT_DTYPE),
        grid=(N,),
        in_specs=[
            pl.BlockSpec((None, C1, HW), lambda n: (n, 0, 0)),   # x (per image)
            pl.BlockSpec(colrow.shape, c2),                      # col/row for edge masks
            pl.BlockSpec(p["w_cv1"].shape, c2),
            pl.BlockSpec(p["s_cv1"].shape, c2),
            pl.BlockSpec(p["b_cv1"].shape, c2),
            pl.BlockSpec(p["w_cv2"].shape, c2),
            pl.BlockSpec(p["s_cv2"].shape, c2),
            pl.BlockSpec(p["b_cv2"].shape, c2),
            pl.BlockSpec(p["wb1"].shape, c3),
            pl.BlockSpec(p["sb1"].shape, c3),
            pl.BlockSpec(p["bb1"].shape, c3),
            pl.BlockSpec(p["wb2"].shape, c3),
            pl.BlockSpec(p["sb2"].shape, c3),
            pl.BlockSpec(p["bb2"].shape, c3),
            pl.BlockSpec(p["w_cv3"].shape, c2),
            pl.BlockSpec(p["s_cv3"].shape, c2),
            pl.BlockSpec(p["b_cv3"].shape, c2),
            pl.BlockSpec(p["w_fc1"].shape, c2),
            pl.BlockSpec(p["w_fc2"].shape, c2),
            pl.BlockSpec(memory_space=pltpu.MemorySpace.SMEM),   # w_sa: flat (18,) scalars
        ],
        out_specs=pl.BlockSpec((None, C2, HW), lambda n: (n, 0, 0)),
        compiler_params=pltpu.CompilerParams(
            dimension_semantics=("parallel",),
            vmem_limit_bytes=32 * 1024 * 1024),
    )(x, colrow,
      p["w_cv1"], p["s_cv1"], p["b_cv1"],
      p["w_cv2"], p["s_cv2"], p["b_cv2"],
      p["wb1"], p["sb1"], p["bb1"], p["wb2"], p["sb2"], p["bb2"],
      p["w_cv3"], p["s_cv3"], p["b_cv3"],
      p["w_fc1"], p["w_fc2"], p["w_sa"])

    return out.reshape(N, C2, H, W)


# ---------------------- parameter packing (fold BN, reorder weights) ----------------------
def pack_params(raw):
    def fold(bnp):
        g, b, m, v = bnp
        s = g / jnp.sqrt(v + BN_EPS)
        return s.reshape(-1, 1), (b - m * s).reshape(-1, 1)

    def pack1x1(w):            # OIHW (Co,Ci,1,1) -> (Co, Ci)
        return w[:, :, 0, 0]

    def pack3x3(w):            # OIHW (Co,Ci,3,3) -> (Co, 9*Ci), cols tap-major then Ci
        co, ci = w.shape[0], w.shape[1]
        return jnp.transpose(w, (0, 2, 3, 1)).reshape(co, 9 * ci)

    s1, b1 = fold(raw["cv1_bn"])
    s2, b2 = fold(raw["cv2_bn"])
    s3, b3 = fold(raw["cv3_bn"])
    sb1, bb1, sb2, bb2 = [], [], [], []
    for blk in raw["m"]:
        s, b = fold(blk["bn1"]); sb1.append(s); bb1.append(b)
        s, b = fold(blk["bn2"]); sb2.append(s); bb2.append(b)

    return dict(
        w_cv1=pack1x1(raw["cv1_w"]), s_cv1=s1, b_cv1=b1,
        w_cv2=pack1x1(raw["cv2_w"]), s_cv2=s2, b_cv2=b2,
        w_cv3=pack1x1(raw["cv3_w"]), s_cv3=s3, b_cv3=b3,
        wb1=jnp.stack([pack1x1(blk["w1"]) for blk in raw["m"]]),
        wb2=jnp.stack([pack3x3(blk["w2"]) for blk in raw["m"]]),
        sb1=jnp.stack(sb1), bb1=jnp.stack(bb1),
        sb2=jnp.stack(sb2), bb2=jnp.stack(bb2),
        w_fc1=jnp.transpose(raw["w_fc1"]),                        # (C2r, C2)
        w_fc2=jnp.transpose(raw["w_fc2"]),                        # (C2, C2r)
        # (1,2,3,3) -> flat (18,), index = (kh*3+kw)*2 + {0:mean, 1:max}
        w_sa=jnp.transpose(raw["sa_w"][0], (1, 2, 0)).reshape(18),
    )


# ------------------------- pure-JAX reference (for checking) -------------------------
def sesac3_reference(x, raw):
    def conv(x, w, pad):
        return lax.conv_general_dilated(
            x, w, window_strides=(1, 1),
            padding=((pad, pad), (pad, pad)),
            dimension_numbers=("NCHW", "OIHW", "NCHW"))

    def cbs(x, w, bnp, pad=0):
        g, b, m, v = bnp
        y = conv(x, w, pad)
        y = (y - m[None, :, None, None]) / jnp.sqrt(v[None, :, None, None] + BN_EPS)
        y = g[None, :, None, None] * y + b[None, :, None, None]
        return y * jax.nn.sigmoid(y)

    t = cbs(x, raw["cv1_w"], raw["cv1_bn"])
    for blk in raw["m"]:
        a = cbs(t, blk["w1"], blk["bn1"])
        t = t + cbs(a, blk["w2"], blk["bn2"], pad=1)
    b2 = cbs(x, raw["cv2_w"], raw["cv2_bn"])
    y = cbs(jnp.concatenate([t, b2], axis=1), raw["cv3_w"], raw["cv3_bn"])

    # SE channel attention (standard bias-free SE)
    mean = y.mean(axis=(2, 3))
    h1 = jnp.maximum(mean @ raw["w_fc1"], 0.0)
    ca = jax.nn.sigmoid(h1 @ raw["w_fc2"])
    out1 = y * ca[:, :, None, None]

    # CBAM-style spatial attention (3x3, bias-free)
    stat = jnp.concatenate([out1.mean(axis=1, keepdims=True),
                            out1.max(axis=1, keepdims=True)], axis=1)
    s = conv(stat, raw["sa_w"], 1)
    return out1 * jax.nn.sigmoid(s)


# ----------------------------------------- test -----------------------------------------
if __name__ == "__main__":
    # TODO(synk): SEModule / SpatialAttention are referenced but not defined in the
    # provided source; standard bias-free SE (reduction=16) and CBAM SpatialAttention
    # (3x3 conv on [mean_C, max_C]) are assumed, matching the reference above.
    N, C1, C2 = 2, 16, 32
    H, W = 16, 16
    n_btl = 1                       # module default n=1
    Cm = C2 // 2                    # e = 0.5
    C2r = max(C2 // 16, 1)          # SEModule reduction = 16

    key = jax.random.PRNGKey(0)
    ks = iter(jax.random.split(key, 64))
    nk = lambda: next(ks)

    x = jax.random.normal(nk(), (N, C1, H, W), jnp.float32)

    def conv_w(co, ci, kh, kw):
        return jax.random.normal(nk(), (co, ci, kh, kw), jnp.float32) / jnp.sqrt(ci * kh * kw)

    def bn(c):
        g = 1.0 + 0.1 * jax.random.normal(nk(), (c,), jnp.float32)
        b = 0.1 * jax.random.normal(nk(), (c,), jnp.float32)
        m = 0.1 * jax.random.normal(nk(), (c,), jnp.float32)
        v = 1.0 + 0.1 * jax.random.uniform(nk(), (c,), jnp.float32)
        return (g, b, m, v)

    cv1_w, cv1_bn = conv_w(Cm, C1, 1, 1), bn(Cm)
    cv2_w, cv2_bn = conv_w(Cm, C1, 1, 1), bn(Cm)
    cv3_w, cv3_bn = conv_w(C2, 2 * Cm, 1, 1), bn(C2)
    m_blocks = [dict(w1=conv_w(Cm, Cm, 1, 1), bn1=bn(Cm),
                     w2=conv_w(Cm, Cm, 3, 3), bn2=bn(Cm)) for _ in range(n_btl)]
    w_fc1 = jax.random.normal(nk(), (C2, C2r), jnp.float32) / jnp.sqrt(C2)
    w_fc2 = jax.random.normal(nk(), (C2r, C2), jnp.float32) / jnp.sqrt(C2r)
    sa_w = conv_w(1, 2, 3, 3)

    raw = dict(cv1_w=cv1_w, cv1_bn=cv1_bn, cv2_w=cv2_w, cv2_bn=cv2_bn,
               cv3_w=cv3_w, cv3_bn=cv3_bn, m=m_blocks,
               w_fc1=w_fc1, w_fc2=w_fc2, sa_w=sa_w)

    params = pack_params(raw)

    out = jax.jit(sesac3_pallas)(x, params)
    out = jax.block_until_ready(out)

    ref = sesac3_reference(x, raw)
    assert out.shape == (N, C2, H, W)
    err = float(jnp.max(jnp.abs(out - ref)))
    # bf16 MXU operands (f32 accumulation / epilogues) -> loosened absolute tolerance.
    assert err < 7e-2, f"mismatch vs reference: {err}"
    print("KERNEL_OK")
</pallas_src>

<mosaic_0001>
module attributes {stable_mosaic.version = 11 : i64} {
  func.func @kernel(%arg0: i32, %arg1: memref<1x16x256xf32, #tpu.memory_space<vmem>>, %arg2: memref<2x256xf32, #tpu.memory_space<vmem>>, %arg3: memref<16x16xf32, #tpu.memory_space<vmem>>, %arg4: memref<16x1xf32, #tpu.memory_space<vmem>>, %arg5: memref<16x1xf32, #tpu.memory_space<vmem>>, %arg6: memref<16x16xf32, #tpu.memory_space<vmem>>, %arg7: memref<16x1xf32, #tpu.memory_space<vmem>>, %arg8: memref<16x1xf32, #tpu.memory_space<vmem>>, %arg9: memref<1x16x16xf32, #tpu.memory_space<vmem>>, %arg10: memref<1x16x1xf32, #tpu.memory_space<vmem>>, %arg11: memref<1x16x1xf32, #tpu.memory_space<vmem>>, %arg12: memref<1x16x144xf32, #tpu.memory_space<vmem>>, %arg13: memref<1x16x1xf32, #tpu.memory_space<vmem>>, %arg14: memref<1x16x1xf32, #tpu.memory_space<vmem>>, %arg15: memref<32x32xf32, #tpu.memory_space<vmem>>, %arg16: memref<32x1xf32, #tpu.memory_space<vmem>>, %arg17: memref<32x1xf32, #tpu.memory_space<vmem>>, %arg18: memref<2x32xf32, #tpu.memory_space<vmem>>, %arg19: memref<32x2xf32, #tpu.memory_space<vmem>>, %arg20: memref<18xf32, #tpu.memory_space<smem>>, %arg21: memref<1x32x256xf32, #tpu.memory_space<vmem>>) attributes {dimension_semantics = [#tpu.dimension_semantics<parallel>], iteration_bounds = array<i64: 2>, scalar_prefetch = 0 : i64, scratch_operands = 0 : i64, tpu.core_type = #tpu.core_type<tc>, window_params = [{transform_indices = @transform_0, window_bounds = array<i64: 1, 16, 256>}, {pipeline_mode = #tpu.pipeline_mode<synchronous>, transform_indices = @transform_1, window_bounds = array<i64: 2, 256>}, {pipeline_mode = #tpu.pipeline_mode<synchronous>, transform_indices = @transform_2, window_bounds = array<i64: 16, 16>}, {pipeline_mode = #tpu.pipeline_mode<synchronous>, transform_indices = @transform_3, window_bounds = array<i64: 16, 1>}, {pipeline_mode = #tpu.pipeline_mode<synchronous>, transform_indices = @transform_4, window_bounds = array<i64: 16, 1>}, {pipeline_mode = #tpu.pipeline_mode<synchronous>, transform_indices = @transform_5, window_bounds = array<i64: 16, 16>}, {pipeline_mode = #tpu.pipeline_mode<synchronous>, transform_indices = @transform_6, window_bounds = array<i64: 16, 1>}, {pipeline_mode = #tpu.pipeline_mode<synchronous>, transform_indices = @transform_7, window_bounds = array<i64: 16, 1>}, {pipeline_mode = #tpu.pipeline_mode<synchronous>, transform_indices = @transform_8, window_bounds = array<i64: 1, 16, 16>}, {pipeline_mode = #tpu.pipeline_mode<synchronous>, transform_indices = @transform_9, window_bounds = array<i64: 1, 16, 1>}, {pipeline_mode = #tpu.pipeline_mode<synchronous>, transform_indices = @transform_10, window_bounds = array<i64: 1, 16, 1>}, {pipeline_mode = #tpu.pipeline_mode<synchronous>, transform_indices = @transform_11, window_bounds = array<i64: 1, 16, 144>}, {pipeline_mode = #tpu.pipeline_mode<synchronous>, transform_indices = @transform_12, window_bounds = array<i64: 1, 16, 1>}, {pipeline_mode = #tpu.pipeline_mode<synchronous>, transform_indices = @transform_13, window_bounds = array<i64: 1, 16, 1>}, {pipeline_mode = #tpu.pipeline_mode<synchronous>, transform_indices = @transform_14, window_bounds = array<i64: 32, 32>}, {pipeline_mode = #tpu.pipeline_mode<synchronous>, transform_indices = @transform_15, window_bounds = array<i64: 32, 1>}, {pipeline_mode = #tpu.pipeline_mode<synchronous>, transform_indices = @transform_16, window_bounds = array<i64: 32, 1>}, {pipeline_mode = #tpu.pipeline_mode<synchronous>, transform_indices = @transform_17, window_bounds = array<i64: 2, 32>}, {pipeline_mode = #tpu.pipeline_mode<synchronous>, transform_indices = @transform_18, window_bounds = array<i64: 32, 2>}, {transform_indices = @transform_19, window_bounds = array<i64: 18>}, {transform_indices = @transform_20, window_bounds = array<i64: 1, 32, 256>}]} {
    %c0 = arith.constant 0 : index
    %c0_0 = arith.constant 0 : index
    %0 = vector.load %arg2[%c0, %c0_0] : memref<2x256xf32, #tpu.memory_space<vmem>>, vector<1x256xf32>
    %c1 = arith.constant 1 : index
    %c0_1 = arith.constant 0 : index
    %1 = vector.load %arg2[%c1, %c0_1] : memref<2x256xf32, #tpu.memory_space<vmem>>, vector<1x256xf32>
    %cst = arith.constant 1.000000e+00 : f32
    %2 = vector.broadcast %cst : f32 to vector<1x256xf32>
    %3 = arith.cmpf oge, %0, %2 : vector<1x256xf32>
    %cst_2 = arith.constant 1.400000e+01 : f32
    %4 = vector.broadcast %cst_2 : f32 to vector<1x256xf32>
    %5 = arith.cmpf ole, %0, %4 : vector<1x256xf32>
    %cst_3 = arith.constant 1.000000e+00 : f32
    %6 = vector.broadcast %cst_3 : f32 to vector<1x256xf32>
    %7 = arith.cmpf oge, %1, %6 : vector<1x256xf32>
    %cst_4 = arith.constant 1.400000e+01 : f32
    %8 = vector.broadcast %cst_4 : f32 to vector<1x256xf32>
    %9 = arith.cmpf ole, %1, %8 : vector<1x256xf32>
    %c0_5 = arith.constant 0 : index
    %c0_6 = arith.constant 0 : index
    %c0_7 = arith.constant 0 : index
    %10 = vector.load %arg1[%c0_5, %c0_6, %c0_7] : memref<1x16x256xf32, #tpu.memory_space<vmem>>, vector<1x16x256xf32>
    %11 = vector.shape_cast %10 : vector<1x16x256xf32> to vector<16x256xf32>
    %c0_8 = arith.constant 0 : index
    %c0_9 = arith.constant 0 : index
    %12 = vector.load %arg3[%c0_8, %c0_9] : memref<16x16xf32, #tpu.memory_space<vmem>>, vector<16x16xf32>
    %13 = arith.truncf %12 : vector<16x16xf32> to vector<16x16xbf16>
    %14 = arith.truncf %11 : vector<16x256xf32> to vector<16x256xbf16>
    %cst_10 = arith.constant dense<0.000000e+00> : vector<16x256xf32>
    %15 = tpu.matmul %13, %14, %cst_10 {dimension_numbers = #tpu.dot_dimension_numbers<[1], [0], [0], [1], [0, 0, 1, 1], [], []>} : vector<16x16xbf16>, vector<16x256xbf16>, vector<16x256xf32> -> vector<16x256xf32>
    %c0_11 = arith.constant 0 : index
    %c0_12 = arith.constant 0 : index
    %16 = vector.load %arg4[%c0_11, %c0_12] : memref<16x1xf32, #tpu.memory_space<vmem>>, vector<16x1xf32>
    %17 = vector.broadcast %16 : vector<16x1xf32> to vector<16x256xf32>
    %18 = arith.mulf %15, %17 : vector<16x256xf32>
    %c0_13 = arith.constant 0 : index
    %c0_14 = arith.constant 0 : index
    %19 = vector.load %arg5[%c0_13, %c0_14] : memref<16x1xf32, #tpu.memory_space<vmem>>, vector<16x1xf32>
    %20 = vector.broadcast %19 : vector<16x1xf32> to vector<16x256xf32>
    %21 = arith.addf %18, %20 : vector<16x256xf32>
    %22 = arith.negf %21 : vector<16x256xf32>
    %23 = math.exp %22 : vector<16x256xf32>
    %cst_15 = arith.constant 1.000000e+00 : f32
    %24 = vector.broadcast %cst_15 : f32 to vector<16x256xf32>
    %25 = arith.addf %24, %23 : vector<16x256xf32>
    %26 = arith.divf %24, %25 : vector<16x256xf32>
    %27 = arith.mulf %21, %26 : vector<16x256xf32>
    %c0_16 = arith.constant 0 : index
    %c0_17 = arith.constant 0 : index
    %c0_18 = arith.constant 0 : index
    %28 = vector.load %arg9[%c0_16, %c0_17, %c0_18] : memref<1x16x16xf32, #tpu.memory_space<vmem>>, vector<1x16x16xf32>
    %29 = vector.shape_cast %28 : vector<1x16x16xf32> to vector<16x16xf32>
    %30 = arith.truncf %29 : vector<16x16xf32> to vector<16x16xbf16>
    %31 = arith.truncf %27 : vector<16x256xf32> to vector<16x256xbf16>
    %cst_19 = arith.constant dense<0.000000e+00> : vector<16x256xf32>
    %32 = tpu.matmul %30, %31, %cst_19 {dimension_numbers = #tpu.dot_dimension_numbers<[1], [0], [0], [1], [0, 0, 1, 1], [], []>} : vector<16x16xbf16>, vector<16x256xbf16>, vector<16x256xf32> -> vector<16x256xf32>
    %c0_20 = arith.constant 0 : index
    %c0_21 = arith.constant 0 : index
    %c0_22 = arith.constant 0 : index
    %33 = vector.load %arg10[%c0_20, %c0_21, %c0_22] : memref<1x16x1xf32, #tpu.memory_space<vmem>>, vector<1x16x1xf32>
    %34 = vector.shape_cast %33 : vector<1x16x1xf32> to vector<16x1xf32>
    %35 = vector.broadcast %34 : vector<16x1xf32> to vector<16x256xf32>
    %36 = arith.mulf %32, %35 : vector<16x256xf32>
    %c0_23 = arith.constant 0 : index
    %c0_24 = arith.constant 0 : index
    %c0_25 = arith.constant 0 : index
    %37 = vector.load %arg11[%c0_23, %c0_24, %c0_25] : memref<1x16x1xf32, #tpu.memory_space<vmem>>, vector<1x16x1xf32>
    %38 = vector.shape_cast %37 : vector<1x16x1xf32> to vector<16x1xf32>
    %39 = vector.broadcast %38 : vector<16x1xf32> to vector<16x256xf32>
    %40 = arith.addf %36, %39 : vector<16x256xf32>
    %41 = arith.negf %40 : vector<16x256xf32>
    %42 = math.exp %41 : vector<16x256xf32>
    %cst_26 = arith.constant 1.000000e+00 : f32
    %43 = vector.broadcast %cst_26 : f32 to vector<16x256xf32>
    %44 = arith.addf %43, %42 : vector<16x256xf32>
    %45 = arith.divf %43, %44 : vector<16x256xf32>
    %46 = arith.mulf %40, %45 : vector<16x256xf32>
    %47 = vector.extract_strided_slice %46 {offsets = [0, 240], sizes = [16, 16], strides = [1, 1]} : vector<16x256xf32> to vector<16x16xf32>
    %48 = vector.extract_strided_slice %46 {offsets = [0, 0], sizes = [16, 240], strides = [1, 1]} : vector<16x256xf32> to vector<16x240xf32>
    %49 = tpu.concatenate %47, %48 in 1 : vector<16x16xf32>, vector<16x240xf32> -> vector<16x256xf32>
    %cst_27 = arith.constant 0.000000e+00 : f32
    %50 = vector.shape_cast %7 : vector<1x256xi1> to vector<1x256xi1>
    %51 = vector.broadcast %50 : vector<1x256xi1> to vector<16x256xi1>
    %52 = vector.broadcast %cst_27 : f32 to vector<16x256xf32>
    %53 = arith.select %51, %49, %52 : vector<16x256xi1>, vector<16x256xf32>
    %54 = vector.extract_strided_slice %53 {offsets = [0, 255], sizes = [16, 1], strides = [1, 1]} : vector<16x256xf32> to vector<16x1xf32>
    %55 = vector.extract_strided_slice %53 {offsets = [0, 0], sizes = [16, 255], strides = [1, 1]} : vector<16x256xf32> to vector<16x255xf32>
    %56 = tpu.concatenate %54, %55 in 1 : vector<16x1xf32>, vector<16x255xf32> -> vector<16x256xf32>
    %cst_28 = arith.constant 0.000000e+00 : f32
    %57 = vector.shape_cast %3 : vector<1x256xi1> to vector<1x256xi1>
    %58 = vector.broadcast %57 : vector<1x256xi1> to vector<16x256xi1>
    %59 = vector.broadcast %cst_28 : f32 to vector<16x256xf32>
    %60 = arith.select %58, %56, %59 : vector<16x256xi1>, vector<16x256xf32>
    %61 = vector.extract_strided_slice %53 {offsets = [0, 1], sizes = [16, 255], strides = [1, 1]} : vector<16x256xf32> to vector<16x255xf32>
    %62 = vector.extract_strided_slice %53 {offsets = [0, 0], sizes = [16, 1], strides = [1, 1]} : vector<16x256xf32> to vector<16x1xf32>
    %63 = tpu.concatenate %61, %62 in 1 : vector<16x255xf32>, vector<16x1xf32> -> vector<16x256xf32>
    %cst_29 = arith.constant 0.000000e+00 : f32
    %64 = vector.shape_cast %5 : vector<1x256xi1> to vector<1x256xi1>
    %65 = vector.broadcast %64 : vector<1x256xi1> to vector<16x256xi1>
    %66 = vector.broadcast %cst_29 : f32 to vector<16x256xf32>
    %67 = arith.select %65, %63, %66 : vector<16x256xi1>, vector<16x256xf32>
    %68 = vector.extract_strided_slice %46 {offsets = [0, 255], sizes = [16, 1], strides = [1, 1]} : vector<16x256xf32> to vector<16x1xf32>
    %69 = vector.extract_strided_slice %46 {offsets = [0, 0], sizes = [16, 255], strides = [1, 1]} : vector<16x256xf32> to vector<16x255xf32>
    %70 = tpu.concatenate %68, %69 in 1 : vector<16x1xf32>, vector<16x255xf32> -> vector<16x256xf32>
    %cst_30 = arith.constant 0.000000e+00 : f32
    %71 = vector.shape_cast %3 : vector<1x256xi1> to vector<1x256xi1>
    %72 = vector.broadcast %71 : vector<1x256xi1> to vector<16x256xi1>
    %73 = vector.broadcast %cst_30 : f32 to vector<16x256xf32>
    %74 = arith.select %72, %70, %73 : vector<16x256xi1>, vector<16x256xf32>
    %75 = vector.extract_strided_slice %46 {offsets = [0, 1], sizes = [16, 255], strides = [1, 1]} : vector<16x256xf32> to vector<16x255xf32>
    %76 = vector.extract_strided_slice %46 {offsets = [0, 0], sizes = [16, 1], strides = [1, 1]} : vector<16x256xf32> to vector<16x1xf32>
    %77 = tpu.concatenate %75, %76 in 1 : vector<16x255xf32>, vector<16x1xf32> -> vector<16x256xf32>
    %cst_31 = arith.constant 0.000000e+00 : f32
    %78 = vector.shape_cast %5 : vector<1x256xi1> to vector<1x256xi1>
    %79 = vector.broadcast %78 : vector<1x256xi1> to vector<16x256xi1>
    %80 = vector.broadcast %cst_31 : f32 to vector<16x256xf32>
    %81 = arith.select %79, %77, %80 : vector<16x256xi1>, vector<16x256xf32>
    %82 = vector.extract_strided_slice %46 {offsets = [0, 16], sizes = [16, 240], strides = [1, 1]} : vector<16x256xf32> to vector<16x240xf32>
    %83 = vector.extract_strided_slice %46 {offsets = [0, 0], sizes = [16, 16], strides = [1, 1]} : vector<16x256xf32> to vector<16x16xf32>
    %84 = tpu.concatenate %82, %83 in 1 : vector<16x240xf32>, vector<16x16xf32> -> vector<16x256xf32>
    %cst_32 = arith.constant 0.000000e+00 : f32
    %85 = vector.shape_cast %9 : vector<1x256xi1> to vector<1x256xi1>
    %86 = vector.broadcast %85 : vector<1x256xi1> to vector<16x256xi1>
    %87 = vector.broadcast %cst_32 : f32 to vector<16x256xf32>
    %88 = arith.select %86, %84, %87 : vector<16x256xi1>, vector<16x256xf32>
    %89 = vector.extract_strided_slice %88 {offsets = [0, 255], sizes = [16, 1], strides = [1, 1]} : vector<16x256xf32> to vector<16x1xf32>
    %90 = vector.extract_strided_slice %88 {offsets = [0, 0], sizes = [16, 255], strides = [1, 1]} : vector<16x256xf32> to vector<16x255xf32>
    %91 = tpu.concatenate %89, %90 in 1 : vector<16x1xf32>, vector<16x255xf32> -> vector<16x256xf32>
    %cst_33 = arith.constant 0.000000e+00 : f32
    %92 = vector.shape_cast %3 : vector<1x256xi1> to vector<1x256xi1>
    %93 = vector.broadcast %92 : vector<1x256xi1> to vector<16x256xi1>
    %94 = vector.broadcast %cst_33 : f32 to vector<16x256xf32>
    %95 = arith.select %93, %91, %94 : vector<16x256xi1>, vector<16x256xf32>
    %96 = vector.extract_strided_slice %88 {offsets = [0, 1], sizes = [16, 255], strides = [1, 1]} : vector<16x256xf32> to vector<16x255xf32>
    %97 = vector.extract_strided_slice %88 {offsets = [0, 0], sizes = [16, 1], strides = [1, 1]} : vector<16x256xf32> to vector<16x1xf32>
    %98 = tpu.concatenate %96, %97 in 1 : vector<16x255xf32>, vector<16x1xf32> -> vector<16x256xf32>
    %cst_34 = arith.constant 0.000000e+00 : f32
    %99 = vector.shape_cast %5 : vector<1x256xi1> to vector<1x256xi1>
    %100 = vector.broadcast %99 : vector<1x256xi1> to vector<16x256xi1>
    %101 = vector.broadcast %cst_34 : f32 to vector<16x256xf32>
    %102 = arith.select %100, %98, %101 : vector<16x256xi1>, vector<16x256xf32>
    %103 = tpu.concatenate %60, %53, %67, %74, %46, %81, %95, %88, %102 in 0 : vector<16x256xf32>, vector<16x256xf32>, vector<16x256xf32>, vector<16x256xf32>, vector<16x256xf32>, vector<16x256xf32>, vector<16x256xf32>, vector<16x256xf32>, vector<16x256xf32> -> vector<144x256xf32>
    %c0_35 = arith.constant 0 : index
    %c0_36 = arith.constant 0 : index
    %c0_37 = arith.constant 0 : index
    %104 = vector.load %arg12[%c0_35, %c0_36, %c0_37] : memref<1x16x144xf32, #tpu.memory_space<vmem>>, vector<1x16x144xf32>
    %105 = vector.shape_cast %104 : vector<1x16x144xf32> to vector<16x144xf32>
    %106 = arith.truncf %105 : vector<16x144xf32> to vector<16x144xbf16>
    %107 = arith.truncf %103 : vector<144x256xf32> to vector<144x256xbf16>
    %cst_38 = arith.constant dense<0.000000e+00> : vector<16x256xf32>
    %108 = tpu.matmul %106, %107, %cst_38 {dimension_numbers = #tpu.dot_dimension_numbers<[1], [0], [0], [1], [0, 0, 1, 1], [], []>} : vector<16x144xbf16>, vector<144x256xbf16>, vector<16x256xf32> -> vector<16x256xf32>
    %c0_39 = arith.constant 0 : index
    %c0_40 = arith.constant 0 : index
    %c0_41 = arith.constant 0 : index
    %109 = vector.load %arg13[%c0_39, %c0_40, %c0_41] : memref<1x16x1xf32, #tpu.memory_space<vmem>>, vector<1x16x1xf32>
    %110 = vector.shape_cast %109 : vector<1x16x1xf32> to vector<16x1xf32>
    %111 = vector.broadcast %110 : vector<16x1xf32> to vector<16x256xf32>
    %112 = arith.mulf %108, %111 : vector<16x256xf32>
    %c0_42 = arith.constant 0 : index
    %c0_43 = arith.constant 0 : index
    %c0_44 = arith.constant 0 : index
    %113 = vector.load %arg14[%c0_42, %c0_43, %c0_44] : memref<1x16x1xf32, #tpu.memory_space<vmem>>, vector<1x16x1xf32>
    %114 = vector.shape_cast %113 : vector<1x16x1xf32> to vector<16x1xf32>
    %115 = vector.broadcast %114 : vector<16x1xf32> to vector<16x256xf32>
    %116 = arith.addf %112, %115 : vector<16x256xf32>
    %117 = arith.negf %116 : vector<16x256xf32>
    %118 = math.exp %117 : vector<16x256xf32>
    %cst_45 = arith.constant 1.000000e+00 : f32
    %119 = vector.broadcast %cst_45 : f32 to vector<16x256xf32>
    %120 = arith.addf %119, %118 : vector<16x256xf32>
    %121 = arith.divf %119, %120 : vector<16x256xf32>
    %122 = arith.mulf %116, %121 : vector<16x256xf32>
    %123 = arith.addf %27, %122 : vector<16x256xf32>
    %c0_46 = arith.constant 0 : index
    %c0_47 = arith.constant 0 : index
    %124 = vector.load %arg6[%c0_46, %c0_47] : memref<16x16xf32, #tpu.memory_space<vmem>>, vector<16x16xf32>
    %125 = arith.truncf %124 : vector<16x16xf32> to vector<16x16xbf16>
    %126 = arith.truncf %11 : vector<16x256xf32> to vector<16x256xbf16>
    %cst_48 = arith.constant dense<0.000000e+00> : vector<16x256xf32>
    %127 = tpu.matmul %125, %126, %cst_48 {dimension_numbers = #tpu.dot_dimension_numbers<[1], [0], [0], [1], [0, 0, 1, 1], [], []>} : vector<16x16xbf16>, vector<16x256xbf16>, vector<16x256xf32> -> vector<16x256xf32>
    %c0_49 = arith.constant 0 : index
    %c0_50 = arith.constant 0 : index
    %128 = vector.load %arg7[%c0_49, %c0_50] : memref<16x1xf32, #tpu.memory_space<vmem>>, vector<16x1xf32>
    %129 = vector.broadcast %128 : vector<16x1xf32> to vector<16x256xf32>
    %130 = arith.mulf %127, %129 : vector<16x256xf32>
    %c0_51 = arith.constant 0 : index
    %c0_52 = arith.constant 0 : index
    %131 = vector.load %arg8[%c0_51, %c0_52] : memref<16x1xf32, #tpu.memory_space<vmem>>, vector<16x1xf32>
    %132 = vector.broadcast %131 : vector<16x1xf32> to vector<16x256xf32>
    %133 = arith.addf %130, %132 : vector<16x256xf32>
    %134 = arith.negf %133 : vector<16x256xf32>
    %135 = math.exp %134 : vector<16x256xf32>
    %cst_53 = arith.constant 1.000000e+00 : f32
    %136 = vector.broadcast %cst_53 : f32 to vector<16x256xf32>
    %137 = arith.addf %136, %135 : vector<16x256xf32>
    %138 = arith.divf %136, %137 : vector<16x256xf32>
    %139 = arith.mulf %133, %138 : vector<16x256xf32>
    %c0_54 = arith.constant 0 : index
    %c0_55 = arith.constant 0 : index
    %140 = vector.load %arg15[%c0_54, %c0_55] : memref<32x32xf32, #tpu.memory_space<vmem>>, vector<32x32xf32>
    %141 = tpu.concatenate %123, %139 in 0 : vector<16x256xf32>, vector<16x256xf32> -> vector<32x256xf32>
    %142 = arith.truncf %140 : vector<32x32xf32> to vector<32x32xbf16>
    %143 = arith.truncf %141 : vector<32x256xf32> to vector<32x256xbf16>
    %cst_56 = arith.constant dense<0.000000e+00> : vector<32x256xf32>
    %144 = tpu.matmul %142, %143, %cst_56 {dimension_numbers = #tpu.dot_dimension_numbers<[1], [0], [0], [1], [0, 0, 1, 1], [], []>} : vector<32x32xbf16>, vector<32x256xbf16>, vector<32x256xf32> -> vector<32x256xf32>
    %c0_57 = arith.constant 0 : index
    %c0_58 = arith.constant 0 : index
    %145 = vector.load %arg16[%c0_57, %c0_58] : memref<32x1xf32, #tpu.memory_space<vmem>>, vector<32x1xf32>
    %146 = vector.broadcast %145 : vector<32x1xf32> to vector<32x256xf32>
    %147 = arith.mulf %144, %146 : vector<32x256xf32>
    %c0_59 = arith.constant 0 : index
    %c0_60 = arith.constant 0 : index
    %148 = vector.load %arg17[%c0_59, %c0_60] : memref<32x1xf32, #tpu.memory_space<vmem>>, vector<32x1xf32>
    %149 = vector.broadcast %148 : vector<32x1xf32> to vector<32x256xf32>
    %150 = arith.addf %147, %149 : vector<32x256xf32>
    %151 = arith.negf %150 : vector<32x256xf32>
    %152 = math.exp %151 : vector<32x256xf32>
    %cst_61 = arith.constant 1.000000e+00 : f32
    %153 = vector.broadcast %cst_61 : f32 to vector<32x256xf32>
    %154 = arith.addf %153, %152 : vector<32x256xf32>
    %155 = arith.divf %153, %154 : vector<32x256xf32>
    %156 = arith.mulf %150, %155 : vector<32x256xf32>
    %cst_62 = arith.constant dense<0.000000e+00> : vector<32xf32>
    %157 = vector.multi_reduction <add>, %156, %cst_62 [1] : vector<32x256xf32> to vector<32xf32>
    %158 = vector.shape_cast %157 : vector<32xf32> to vector<32x1xf32>
    %cst_63 = arith.constant 3.906250e-03 : f32
    %159 = vector.broadcast %cst_63 : f32 to vector<32x1xf32>
    %160 = arith.mulf %158, %159 : vector<32x1xf32>
    %c0_64 = arith.constant 0 : index
    %c0_65 = arith.constant 0 : index
    %161 = vector.load %arg18[%c0_64, %c0_65] : memref<2x32xf32, #tpu.memory_space<vmem>>, vector<2x32xf32>
    %cst_66 = arith.constant dense<0.000000e+00> : vector<2x1xf32>
    %162 = tpu.matmul %161, %160, %cst_66 {dimension_numbers = #tpu.dot_dimension_numbers<[1], [0], [0], [1], [0, 0, 1, 1], [], []>} : vector<2x32xf32>, vector<32x1xf32>, vector<2x1xf32> -> vector<2x1xf32>
    %cst_67 = arith.constant 0.000000e+00 : f32
    %163 = vector.broadcast %cst_67 : f32 to vector<2x1xf32>
    %164 = arith.maximumf %162, %163 : vector<2x1xf32>
    %c0_68 = arith.constant 0 : index
    %c0_69 = arith.constant 0 : index
    %165 = vector.load %arg19[%c0_68, %c0_69] : memref<32x2xf32, #tpu.memory_space<vmem>>, vector<32x2xf32>
    %cst_70 = arith.constant dense<0.000000e+00> : vector<32x1xf32>
    %166 = tpu.matmul %165, %164, %cst_70 {dimension_numbers = #tpu.dot_dimension_numbers<[1], [0], [0], [1], [0, 0, 1, 1], [], []>} : vector<32x2xf32>, vector<2x1xf32>, vector<32x1xf32> -> vector<32x1xf32>
    %167 = arith.negf %166 : vector<32x1xf32>
    %168 = math.exp %167 : vector<32x1xf32>
    %cst_71 = arith.constant 1.000000e+00 : f32
    %169 = vector.broadcast %cst_71 : f32 to vector<32x1xf32>
    %170 = arith.addf %169, %168 : vector<32x1xf32>
    %171 = arith.divf %169, %170 : vector<32x1xf32>
    %172 = vector.broadcast %171 : vector<32x1xf32> to vector<32x256xf32>
    %173 = arith.mulf %156, %172 : vector<32x256xf32>
    %cst_72 = arith.constant dense<0.000000e+00> : vector<256xf32>
    %174 = vector.multi_reduction <add>, %173, %cst_72 [0] : vector<32x256xf32> to vector<256xf32>
    %175 = vector.shape_cast %174 : vector<256xf32> to vector<1x256xf32>
    %cst_73 = arith.constant 3.200000e+01 : f32
    %176 = vector.broadcast %cst_73 : f32 to vector<1x256xf32>
    %177 = arith.divf %175, %176 : vector<1x256xf32>
    %cst_74 = arith.constant dense<0xFF800000> : vector<256xf32>
    %178 = vector.multi_reduction <maximumf>, %173, %cst_74 [0] : vector<32x256xf32> to vector<256xf32>
    %179 = vector.shape_cast %178 : vector<256xf32> to vector<1x256xf32>
    %180 = vector.extract_strided_slice %177 {offsets = [0, 240], sizes = [1, 16], strides = [1, 1]} : vector<1x256xf32> to vector<1x16xf32>
    %181 = vector.extract_strided_slice %177 {offsets = [0, 0], sizes = [1, 240], strides = [1, 1]} : vector<1x256xf32> to vector<1x240xf32>
    %182 = tpu.concatenate %180, %181 in 1 : vector<1x16xf32>, vector<1x240xf32> -> vector<1x256xf32>
    %cst_75 = arith.constant 0.000000e+00 : f32
    %183 = vector.broadcast %cst_75 : f32 to vector<1x256xf32>
    %184 = arith.select %7, %182, %183 : vector<1x256xi1>, vector<1x256xf32>
    %185 = vector.extract_strided_slice %184 {offsets = [0, 255], sizes = [1, 1], strides = [1, 1]} : vector<1x256xf32> to vector<1x1xf32>
    %186 = vector.extract_strided_slice %184 {offsets = [0, 0], sizes = [1, 255], strides = [1, 1]} : vector<1x256xf32> to vector<1x255xf32>
    %187 = tpu.concatenate %185, %186 in 1 : vector<1x1xf32>, vector<1x255xf32> -> vector<1x256xf32>
    %cst_76 = arith.constant 0.000000e+00 : f32
    %188 = vector.broadcast %cst_76 : f32 to vector<1x256xf32>
    %189 = arith.select %3, %187, %188 : vector<1x256xi1>, vector<1x256xf32>
    %190 = vector.extract_strided_slice %184 {offsets = [0, 1], sizes = [1, 255], strides = [1, 1]} : vector<1x256xf32> to vector<1x255xf32>
    %191 = vector.extract_strided_slice %184 {offsets = [0, 0], sizes = [1, 1], strides = [1, 1]} : vector<1x256xf32> to vector<1x1xf32>
    %192 = tpu.concatenate %190, %191 in 1 : vector<1x255xf32>, vector<1x1xf32> -> vector<1x256xf32>
    %cst_77 = arith.constant 0.000000e+00 : f32
    %193 = vector.broadcast %cst_77 : f32 to vector<1x256xf32>
    %194 = arith.select %5, %192, %193 : vector<1x256xi1>, vector<1x256xf32>
    %195 = vector.extract_strided_slice %177 {offsets = [0, 255], sizes = [1, 1], strides = [1, 1]} : vector<1x256xf32> to vector<1x1xf32>
    %196 = vector.extract_strided_slice %177 {offsets = [0, 0], sizes = [1, 255], strides = [1, 1]} : vector<1x256xf32> to vector<1x255xf32>
    %197 = tpu.concatenate %195, %196 in 1 : vector<1x1xf32>, vector<1x255xf32> -> vector<1x256xf32>
    %cst_78 = arith.constant 0.000000e+00 : f32
    %198 = vector.broadcast %cst_78 : f32 to vector<1x256xf32>
    %199 = arith.select %3, %197, %198 : vector<1x256xi1>, vector<1x256xf32>
    %200 = vector.extract_strided_slice %177 {offsets = [0, 1], sizes = [1, 255], strides = [1, 1]} : vector<1x256xf32> to vector<1x255xf32>
    %201 = vector.extract_strided_slice %177 {offsets = [0, 0], sizes = [1, 1], strides = [1, 1]} : vector<1x256xf32> to vector<1x1xf32>
    %202 = tpu.concatenate %200, %201 in 1 : vector<1x255xf32>, vector<1x1xf32> -> vector<1x256xf32>
    %cst_79 = arith.constant 0.000000e+00 : f32
    %203 = vector.broadcast %cst_79 : f32 to vector<1x256xf32>
    %204 = arith.select %5, %202, %203 : vector<1x256xi1>, vector<1x256xf32>
    %205 = vector.extract_strided_slice %177 {offsets = [0, 16], sizes = [1, 240], strides = [1, 1]} : vector<1x256xf32> to vector<1x240xf32>
    %206 = vector.extract_strided_slice %177 {offsets = [0, 0], sizes = [1, 16], strides = [1, 1]} : vector<1x256xf32> to vector<1x16xf32>
    %207 = tpu.concatenate %205, %206 in 1 : vector<1x240xf32>, vector<1x16xf32> -> vector<1x256xf32>
    %cst_80 = arith.constant 0.000000e+00 : f32
    %208 = vector.broadcast %cst_80 : f32 to vector<1x256xf32>
    %209 = arith.select %9, %207, %208 : vector<1x256xi1>, vector<1x256xf32>
    %210 = vector.extract_strided_slice %209 {offsets = [0, 255], sizes = [1, 1], strides = [1, 1]} : vector<1x256xf32> to vector<1x1xf32>
    %211 = vector.extract_strided_slice %209 {offsets = [0, 0], sizes = [1, 255], strides = [1, 1]} : vector<1x256xf32> to vector<1x255xf32>
    %212 = tpu.concatenate %210, %211 in 1 : vector<1x1xf32>, vector<1x255xf32> -> vector<1x256xf32>
    %cst_81 = arith.constant 0.000000e+00 : f32
    %213 = vector.broadcast %cst_81 : f32 to vector<1x256xf32>
    %214 = arith.select %3, %212, %213 : vector<1x256xi1>, vector<1x256xf32>
    %215 = vector.extract_strided_slice %209 {offsets = [0, 1], sizes = [1, 255], strides = [1, 1]} : vector<1x256xf32> to vector<1x255xf32>
    %216 = vector.extract_strided_slice %209 {offsets = [0, 0], sizes = [1, 1], strides = [1, 1]} : vector<1x256xf32> to vector<1x1xf32>
    %217 = tpu.concatenate %215, %216 in 1 : vector<1x255xf32>, vector<1x1xf32> -> vector<1x256xf32>
    %cst_82 = arith.constant 0.000000e+00 : f32
    %218 = vector.broadcast %cst_82 : f32 to vector<1x256xf32>
    %219 = arith.select %5, %217, %218 : vector<1x256xi1>, vector<1x256xf32>
    %220 = vector.extract_strided_slice %179 {offsets = [0, 240], sizes = [1, 16], strides = [1, 1]} : vector<1x256xf32> to vector<1x16xf32>
    %221 = vector.extract_strided_slice %179 {offsets = [0, 0], sizes = [1, 240], strides = [1, 1]} : vector<1x256xf32> to vector<1x240xf32>
    %222 = tpu.concatenate %220, %221 in 1 : vector<1x16xf32>, vector<1x240xf32> -> vector<1x256xf32>
    %cst_83 = arith.constant 0.000000e+00 : f32
    %223 = vector.broadcast %cst_83 : f32 to vector<1x256xf32>
    %224 = arith.select %7, %222, %223 : vector<1x256xi1>, vector<1x256xf32>
    %225 = vector.extract_strided_slice %224 {offsets = [0, 255], sizes = [1, 1], strides = [1, 1]} : vector<1x256xf32> to vector<1x1xf32>
    %226 = vector.extract_strided_slice %224 {offsets = [0, 0], sizes = [1, 255], strides = [1, 1]} : vector<1x256xf32> to vector<1x255xf32>
    %227 = tpu.concatenate %225, %226 in 1 : vector<1x1xf32>, vector<1x255xf32> -> vector<1x256xf32>
    %cst_84 = arith.constant 0.000000e+00 : f32
    %228 = vector.broadcast %cst_84 : f32 to vector<1x256xf32>
    %229 = arith.select %3, %227, %228 : vector<1x256xi1>, vector<1x256xf32>
    %230 = vector.extract_strided_slice %224 {offsets = [0, 1], sizes = [1, 255], strides = [1, 1]} : vector<1x256xf32> to vector<1x255xf32>
    %231 = vector.extract_strided_slice %224 {offsets = [0, 0], sizes = [1, 1], strides = [1, 1]} : vector<1x256xf32> to vector<1x1xf32>
    %232 = tpu.concatenate %230, %231 in 1 : vector<1x255xf32>, vector<1x1xf32> -> vector<1x256xf32>
    %cst_85 = arith.constant 0.000000e+00 : f32
    %233 = vector.broadcast %cst_85 : f32 to vector<1x256xf32>
    %234 = arith.select %5, %232, %233 : vector<1x256xi1>, vector<1x256xf32>
    %235 = vector.extract_strided_slice %179 {offsets = [0, 255], sizes = [1, 1], strides = [1, 1]} : vector<1x256xf32> to vector<1x1xf32>
    %236 = vector.extract_strided_slice %179 {offsets = [0, 0], sizes = [1, 255], strides = [1, 1]} : vector<1x256xf32> to vector<1x255xf32>
    %237 = tpu.concatenate %235, %236 in 1 : vector<1x1xf32>, vector<1x255xf32> -> vector<1x256xf32>
    %cst_86 = arith.constant 0.000000e+00 : f32
    %238 = vector.broadcast %cst_86 : f32 to vector<1x256xf32>
    %239 = arith.select %3, %237, %238 : vector<1x256xi1>, vector<1x256xf32>
    %240 = vector.extract_strided_slice %179 {offsets = [0, 1], sizes = [1, 255], strides = [1, 1]} : vector<1x256xf32> to vector<1x255xf32>
    %241 = vector.extract_strided_slice %179 {offsets = [0, 0], sizes = [1, 1], strides = [1, 1]} : vector<1x256xf32> to vector<1x1xf32>
    %242 = tpu.concatenate %240, %241 in 1 : vector<1x255xf32>, vector<1x1xf32> -> vector<1x256xf32>
    %cst_87 = arith.constant 0.000000e+00 : f32
    %243 = vector.broadcast %cst_87 : f32 to vector<1x256xf32>
    %244 = arith.select %5, %242, %243 : vector<1x256xi1>, vector<1x256xf32>
    %245 = vector.extract_strided_slice %179 {offsets = [0, 16], sizes = [1, 240], strides = [1, 1]} : vector<1x256xf32> to vector<1x240xf32>
    %246 = vector.extract_strided_slice %179 {offsets = [0, 0], sizes = [1, 16], strides = [1, 1]} : vector<1x256xf32> to vector<1x16xf32>
    %247 = tpu.concatenate %245, %246 in 1 : vector<1x240xf32>, vector<1x16xf32> -> vector<1x256xf32>
    %cst_88 = arith.constant 0.000000e+00 : f32
    %248 = vector.broadcast %cst_88 : f32 to vector<1x256xf32>
    %249 = arith.select %9, %247, %248 : vector<1x256xi1>, vector<1x256xf32>
    %250 = vector.extract_strided_slice %249 {offsets = [0, 255], sizes = [1, 1], strides = [1, 1]} : vector<1x256xf32> to vector<1x1xf32>
    %251 = vector.extract_strided_slice %249 {offsets = [0, 0], sizes = [1, 255], strides = [1, 1]} : vector<1x256xf32> to vector<1x255xf32>
    %252 = tpu.concatenate %250, %251 in 1 : vector<1x1xf32>, vector<1x255xf32> -> vector<1x256xf32>
    %cst_89 = arith.constant 0.000000e+00 : f32
    %253 = vector.broadcast %cst_89 : f32 to vector<1x256xf32>
    %254 = arith.select %3, %252, %253 : vector<1x256xi1>, vector<1x256xf32>
    %255 = vector.extract_strided_slice %249 {offsets = [0, 1], sizes = [1, 255], strides = [1, 1]} : vector<1x256xf32> to vector<1x255xf32>
    %256 = vector.extract_strided_slice %249 {offsets = [0, 0], sizes = [1, 1], strides = [1, 1]} : vector<1x256xf32> to vector<1x1xf32>
    %257 = tpu.concatenate %255, %256 in 1 : vector<1x255xf32>, vector<1x1xf32> -> vector<1x256xf32>
    %cst_90 = arith.constant 0.000000e+00 : f32
    %258 = vector.broadcast %cst_90 : f32 to vector<1x256xf32>
    %259 = arith.select %5, %257, %258 : vector<1x256xi1>, vector<1x256xf32>
    %c0_91 = arith.constant 0 : index
    %260 = memref.load %arg20[%c0_91] : memref<18xf32, #tpu.memory_space<smem>>
    %261 = vector.broadcast %260 : f32 to vector<1x256xf32>
    %262 = arith.mulf %189, %261 : vector<1x256xf32>
    %c1_92 = arith.constant 1 : index
    %263 = memref.load %arg20[%c1_92] : memref<18xf32, #tpu.memory_space<smem>>
    %264 = vector.broadcast %263 : f32 to vector<1x256xf32>
    %265 = arith.mulf %229, %264 : vector<1x256xf32>
    %266 = arith.addf %262, %265 : vector<1x256xf32>
    %c2 = arith.constant 2 : index
    %267 = memref.load %arg20[%c2] : memref<18xf32, #tpu.memory_space<smem>>
    %268 = vector.broadcast %267 : f32 to vector<1x256xf32>
    %269 = arith.mulf %184, %268 : vector<1x256xf32>
    %270 = arith.addf %266, %269 : vector<1x256xf32>
    %c3 = arith.constant 3 : index
    %271 = memref.load %arg20[%c3] : memref<18xf32, #tpu.memory_space<smem>>
    %272 = vector.broadcast %271 : f32 to vector<1x256xf32>
    %273 = arith.mulf %224, %272 : vector<1x256xf32>
    %274 = arith.addf %270, %273 : vector<1x256xf32>
    %c4 = arith.constant 4 : index
    %275 = memref.load %arg20[%c4] : memref<18xf32, #tpu.memory_space<smem>>
    %276 = vector.broadcast %275 : f32 to vector<1x256xf32>
    %277 = arith.mulf %194, %276 : vector<1x256xf32>
    %278 = arith.addf %274, %277 : vector<1x256xf32>
    %c5 = arith.constant 5 : index
    %279 = memref.load %arg20[%c5] : memref<18xf32, #tpu.memory_space<smem>>
    %280 = vector.broadcast %279 : f32 to vector<1x256xf32>
    %281 = arith.mulf %234, %280 : vector<1x256xf32>
    %282 = arith.addf %278, %281 : vector<1x256xf32>
    %c6 = arith.constant 6 : index
    %283 = memref.load %arg20[%c6] : memref<18xf32, #tpu.memory_space<smem>>
    %284 = vector.broadcast %283 : f32 to vector<1x256xf32>
    %285 = arith.mulf %199, %284 : vector<1x256xf32>
    %286 = arith.addf %282, %285 : vector<1x256xf32>
    %c7 = arith.constant 7 : index
    %287 = memref.load %arg20[%c7] : memref<18xf32, #tpu.memory_space<smem>>
    %288 = vector.broadcast %287 : f32 to vector<1x256xf32>
    %289 = arith.mulf %239, %288 : vector<1x256xf32>
    %290 = arith.addf %286, %289 : vector<1x256xf32>
    %c8 = arith.constant 8 : index
    %291 = memref.load %arg20[%c8] : memref<18xf32, #tpu.memory_space<smem>>
    %292 = vector.broadcast %291 : f32 to vector<1x256xf32>
    %293 = arith.mulf %177, %292 : vector<1x256xf32>
    %294 = arith.addf %290, %293 : vector<1x256xf32>
    %c9 = arith.constant 9 : index
    %295 = memref.load %arg20[%c9] : memref<18xf32, #tpu.memory_space<smem>>
    %296 = vector.broadcast %295 : f32 to vector<1x256xf32>
    %297 = arith.mulf %179, %296 : vector<1x256xf32>
    %298 = arith.addf %294, %297 : vector<1x256xf32>
    %c10 = arith.constant 10 : index
    %299 = memref.load %arg20[%c10] : memref<18xf32, #tpu.memory_space<smem>>
    %300 = vector.broadcast %299 : f32 to vector<1x256xf32>
    %301 = arith.mulf %204, %300 : vector<1x256xf32>
    %302 = arith.addf %298, %301 : vector<1x256xf32>
    %c11 = arith.constant 11 : index
    %303 = memref.load %arg20[%c11] : memref<18xf32, #tpu.memory_space<smem>>
    %304 = vector.broadcast %303 : f32 to vector<1x256xf32>
    %305 = arith.mulf %244, %304 : vector<1x256xf32>
    %306 = arith.addf %302, %305 : vector<1x256xf32>
    %c12 = arith.constant 12 : index
    %307 = memref.load %arg20[%c12] : memref<18xf32, #tpu.memory_space<smem>>
    %308 = vector.broadcast %307 : f32 to vector<1x256xf32>
    %309 = arith.mulf %214, %308 : vector<1x256xf32>
    %310 = arith.addf %306, %309 : vector<1x256xf32>
    %c13 = arith.constant 13 : index
    %311 = memref.load %arg20[%c13] : memref<18xf32, #tpu.memory_space<smem>>
    %312 = vector.broadcast %311 : f32 to vector<1x256xf32>
    %313 = arith.mulf %254, %312 : vector<1x256xf32>
    %314 = arith.addf %310, %313 : vector<1x256xf32>
    %c14 = arith.constant 14 : index
    %315 = memref.load %arg20[%c14] : memref<18xf32, #tpu.memory_space<smem>>
    %316 = vector.broadcast %315 : f32 to vector<1x256xf32>
    %317 = arith.mulf %209, %316 : vector<1x256xf32>
    %318 = arith.addf %314, %317 : vector<1x256xf32>
    %c15 = arith.constant 15 : index
    %319 = memref.load %arg20[%c15] : memref<18xf32, #tpu.memory_space<smem>>
    %320 = vector.broadcast %319 : f32 to vector<1x256xf32>
    %321 = arith.mulf %249, %320 : vector<1x256xf32>
    %322 = arith.addf %318, %321 : vector<1x256xf32>
    %c16 = arith.constant 16 : index
    %323 = memref.load %arg20[%c16] : memref<18xf32, #tpu.memory_space<smem>>
    %324 = vector.broadcast %323 : f32 to vector<1x256xf32>
    %325 = arith.mulf %219, %324 : vector<1x256xf32>
    %326 = arith.addf %322, %325 : vector<1x256xf32>
    %c17 = arith.constant 17 : index
    %327 = memref.load %arg20[%c17] : memref<18xf32, #tpu.memory_space<smem>>
    %328 = vector.broadcast %327 : f32 to vector<1x256xf32>
    %329 = arith.mulf %259, %328 : vector<1x256xf32>
    %330 = arith.addf %326, %329 : vector<1x256xf32>
    %331 = arith.negf %330 : vector<1x256xf32>
    %332 = math.exp %331 : vector<1x256xf32>
    %cst_93 = arith.constant 1.000000e+00 : f32
    %333 = vector.broadcast %cst_93 : f32 to vector<1x256xf32>
    %334 = arith.addf %333, %332 : vector<1x256xf32>
    %335 = arith.divf %333, %334 : vector<1x256xf32>
    %336 = vector.broadcast %335 : vector<1x256xf32> to vector<32x256xf32>
    %337 = arith.mulf %173, %336 : vector<32x256xf32>
    %c0_94 = arith.constant 0 : index
    %c0_95 = arith.constant 0 : index
    %c0_96 = arith.constant 0 : index
    %338 = vector.load %arg21[%c0_94, %c0_95, %c0_96] : memref<1x32x256xf32, #tpu.memory_space<vmem>>, vector<1x32x256xf32>
    %339 = vector.shape_cast %338 : vector<1x32x256xf32> to vector<32x256xf32>
    %340 = vector.shape_cast %337 : vector<32x256xf32> to vector<1x32x256xf32>
    tpu.vector_store %arg21[%c0_94, %c0_95, %c0_96], %340 {strides = array<i32>} : memref<1x32x256xf32, #tpu.memory_space<vmem>>, vector<1x32x256xf32>,
    return
  }
  func.func @transform_0(%arg0: i32) -> (i32, i32, i32) {
    %c0_i32 = arith.constant 0 : i32
    %c0_i32_0 = arith.constant 0 : i32
    %c0_i32_1 = arith.constant 0 : i32
    return %arg0, %c0_i32, %c0_i32_0 : i32, i32, i32
  }
  func.func @transform_1(%arg0: i32) -> (i32, i32) {
    %c0_i32 = arith.constant 0 : i32
    %c0_i32_0 = arith.constant 0 : i32
    %c0_i32_1 = arith.constant 0 : i32
    return %c0_i32, %c0_i32_0 : i32, i32
  }
  func.func @transform_2(%arg0: i32) -> (i32, i32) {
    %c0_i32 = arith.constant 0 : i32
    %c0_i32_0 = arith.constant 0 : i32
    %c0_i32_1 = arith.constant 0 : i32
    return %c0_i32, %c0_i32_0 : i32, i32
  }
  func.func @transform_3(%arg0: i32) -> (i32, i32) {
    %c0_i32 = arith.constant 0 : i32
    %c0_i32_0 = arith.constant 0 : i32
    %c0_i32_1 = arith.constant 0 : i32
    return %c0_i32, %c0_i32_0 : i32, i32
  }
  func.func @transform_4(%arg0: i32) -> (i32, i32) {
    %c0_i32 = arith.constant 0 : i32
    %c0_i32_0 = arith.constant 0 : i32
    %c0_i32_1 = arith.constant 0 : i32
    return %c0_i32, %c0_i32_0 : i32, i32
  }
  func.func @transform_5(%arg0: i32) -> (i32, i32) {
    %c0_i32 = arith.constant 0 : i32
    %c0_i32_0 = arith.constant 0 : i32
    %c0_i32_1 = arith.constant 0 : i32
    return %c0_i32, %c0_i32_0 : i32, i32
  }
  func.func @transform_6(%arg0: i32) -> (i32, i32) {
    %c0_i32 = arith.constant 0 : i32
    %c0_i32_0 = arith.constant 0 : i32
    %c0_i32_1 = arith.constant 0 : i32
    return %c0_i32, %c0_i32_0 : i32, i32
  }
  func.func @transform_7(%arg0: i32) -> (i32, i32) {
    %c0_i32 = arith.constant 0 : i32
    %c0_i32_0 = arith.constant 0 : i32
    %c0_i32_1 = arith.constant 0 : i32
    return %c0_i32, %c0_i32_0 : i32, i32
  }
  func.func @transform_8(%arg0: i32) -> (i32, i32, i32) {
    %c0_i32 = arith.constant 0 : i32
    %c0_i32_0 = arith.constant 0 : i32
    %c0_i32_1 = arith.constant 0 : i32
    %c0_i32_2 = arith.constant 0 : i32
    return %c0_i32, %c0_i32_0, %c0_i32_1 : i32, i32, i32
  }
  func.func @transform_9(%arg0: i32) -> (i32, i32, i32) {
    %c0_i32 = arith.constant 0 : i32
    %c0_i32_0 = arith.constant 0 : i32
    %c0_i32_1 = arith.constant 0 : i32
    %c0_i32_2 = arith.constant 0 : i32
    return %c0_i32, %c0_i32_0, %c0_i32_1 : i32, i32, i32
  }
  func.func @transform_10(%arg0: i32) -> (i32, i32, i32) {
    %c0_i32 = arith.constant 0 : i32
    %c0_i32_0 = arith.constant 0 : i32
    %c0_i32_1 = arith.constant 0 : i32
    %c0_i32_2 = arith.constant 0 : i32
    return %c0_i32, %c0_i32_0, %c0_i32_1 : i32, i32, i32
  }
  func.func @transform_11(%arg0: i32) -> (i32, i32, i32) {
    %c0_i32 = arith.constant 0 : i32
    %c0_i32_0 = arith.constant 0 : i32
    %c0_i32_1 = arith.constant 0 : i32
    %c0_i32_2 = arith.constant 0 : i32
    return %c0_i32, %c0_i32_0, %c0_i32_1 : i32, i32, i32
  }
  func.func @transform_12(%arg0: i32) -> (i32, i32, i32) {
    %c0_i32 = arith.constant 0 : i32
    %c0_i32_0 = arith.constant 0 : i32
    %c0_i32_1 = arith.constant 0 : i32
    %c0_i32_2 = arith.constant 0 : i32
    return %c0_i32, %c0_i32_0, %c0_i32_1 : i32, i32, i32
  }
  func.func @transform_13(%arg0: i32) -> (i32, i32, i32) {
    %c0_i32 = arith.constant 0 : i32
    %c0_i32_0 = arith.constant 0 : i32
    %c0_i32_1 = arith.constant 0 : i32
    %c0_i32_2 = arith.constant 0 : i32
    return %c0_i32, %c0_i32_0, %c0_i32_1 : i32, i32, i32
  }
  func.func @transform_14(%arg0: i32) -> (i32, i32) {
    %c0_i32 = arith.constant 0 : i32
    %c0_i32_0 = arith.constant 0 : i32
    %c0_i32_1 = arith.constant 0 : i32
    return %c0_i32, %c0_i32_0 : i32, i32
  }
  func.func @transform_15(%arg0: i32) -> (i32, i32) {
    %c0_i32 = arith.constant 0 : i32
    %c0_i32_0 = arith.constant 0 : i32
    %c0_i32_1 = arith.constant 0 : i32
    return %c0_i32, %c0_i32_0 : i32, i32
  }
  func.func @transform_16(%arg0: i32) -> (i32, i32) {
    %c0_i32 = arith.constant 0 : i32
    %c0_i32_0 = arith.constant 0 : i32
    %c0_i32_1 = arith.constant 0 : i32
    return %c0_i32, %c0_i32_0 : i32, i32
  }
  func.func @transform_17(%arg0: i32) -> (i32, i32) {
    %c0_i32 = arith.constant 0 : i32
    %c0_i32_0 = arith.constant 0 : i32
    %c0_i32_1 = arith.constant 0 : i32
    return %c0_i32, %c0_i32_0 : i32, i32
  }
  func.func @transform_18(%arg0: i32) -> (i32, i32) {
    %c0_i32 = arith.constant 0 : i32
    %c0_i32_0 = arith.constant 0 : i32
    %c0_i32_1 = arith.constant 0 : i32
    return %c0_i32, %c0_i32_0 : i32, i32
  }
  func.func @transform_19(%arg0: i32) -> i32 {
    %c0_i32 = arith.constant 0 : i32
    %c0_i32_0 = arith.constant 0 : i32
    return %c0_i32 : i32
  }
  func.func @transform_20(%arg0: i32) -> (i32, i32, i32) {
    %c0_i32 = arith.constant 0 : i32
    %c0_i32_0 = arith.constant 0 : i32
    %c0_i32_1 = arith.constant 0 : i32
    return %arg0, %c0_i32, %c0_i32_0 : i32, i32, i32
  }
}

</mosaic_0001>

<bundles_post_ra>
// kernel: sesac3_pallas.1
= control target key start
LH: loop header
LB: loop body
LE: loop exit
PB: predicated region body
PF: predicated region fallthrough
CT: control target
= control target key end

     0   :  { %s3992_s0 = inlined_call_operand.vmem [shape: f32[2,16,256], index: 0, kind: input, shape index: {}]   ;;  %s3993_s1 = inlined_call_operand.vmem [shape: f32[2,256], index: 1, kind: input, shape index: {}]   ;;  %s3994_s2 = inlined_call_operand.vmem [shape: f32[16,16], index: 2, kind: input, shape index: {}]   ;;  %s3995_s3 = inlined_call_operand.vmem [shape: f32[16,1], index: 3, kind: input, shape index: {}]   ;;  %s3996_s4 = inlined_call_operand.vmem [shape: f32[16,1], index: 4, kind: input, shape index: {}]   ;;  %s3997_s5 = inlined_call_operand.vmem [shape: f32[16,16], index: 5, kind: input, shape index: {}]   ;;  %s3998_s6 = inlined_call_operand.vmem [shape: f32[16,1], index: 6, kind: input, shape index: {}]   ;;  %s3999_s7 = inlined_call_operand.vmem [shape: f32[16,1], index: 7, kind: input, shape index: {}]   ;;  %s4000_s8 = inlined_call_operand.vmem [shape: f32[1,16,16], index: 8, kind: input, shape index: {}]   ;;  %s4001_s9 = inlined_call_operand.vmem [shape: f32[1,16,1], index: 9, kind: input, shape index: {}]   ;;  %s4002_s10 = inlined_call_operand.vmem [shape: f32[1,16,1], index: 10, kind: input, shape index: {}]   ;;  %s4003_s11 = inlined_call_operand.vmem [shape: f32[1,16,144], index: 11, kind: input, shape index: {}]   ;;  %s4004_s12 = inlined_call_operand.vmem [shape: f32[1,16,1], index: 12, kind: input, shape index: {}]   ;;  %s4005_s13 = inlined_call_operand.vmem [shape: f32[1,16,1], index: 13, kind: input, shape index: {}]   ;;  %s4006_s14 = inlined_call_operand.vmem [shape: f32[32,32], index: 14, kind: input, shape index: {}]   ;;  %s4007_s15 = inlined_call_operand.vmem [shape: f32[32,1], index: 15, kind: input, shape index: {}]   ;;  %s4008_s16 = inlined_call_operand.vmem [shape: f32[32,1], index: 16, kind: input, shape index: {}]   ;;  %s4009_s17 = inlined_call_operand.vmem [shape: f32[2,32], index: 17, kind: input, shape index: {}]   ;;  %s4010_s18 = inlined_call_operand.vmem [shape: f32[32,2], index: 18, kind: input, shape index: {}]   ;;  %s4011_s19 = inlined_call_operand.vmem [shape: f32[18], index: 19, kind: input, shape index: {}]   ;;  %s4012_s20 = inlined_call_operand.vmem [shape: f32[2,32,256], index: 20, kind: output, shape index: {}]  }
   0x1   :  { %4029 = sst [smem:[#allocation5_spill]] %s3992_s0 }
   0x2   :  { %4030 = sst [smem:[#allocation6_spill]] %s3993_s1 }
   0x3   :  { %4031 = sst [smem:[#allocation7_spill]] %s3994_s2 }
   0x4   :  { %4032 = sst [smem:[#allocation8_spill]] %s3995_s3 }
   0x5   :  { %4033 = sst [smem:[#allocation9_spill]] %s3996_s4 }
   0x6   :  { %4034 = sst [smem:[#allocation10_spill]] %s4011_s19 }
   0x7   :  { %25 = vsyncpa [#allocation3], 0  ;;  %s2938_s1 = smov 0  }
   0x8 LB: > { %s2443_s22 = sadd.s32 4294967295, %s2824_s1   ;;  %p2445_p0 = scmp.ge.s32.totalorder %s2824_s1, 1  ;;  %s2824_s1 = sphi %s2938_s1, %s31_s1  }
   0x9   : > { %p487_p1 = scmp.lt.s32.totalorder %s2824_s1, 3  ;;  %s4035_s19 = sld [smem:[#allocation10_spill]] }
   0xa   : > { %p2581_p3 = scmp.eq.s32.totalorder %s2443_s22, 0  ;;  %s2826_s25 = smov [#allocation2]  }
   0xb   : > { %p488_p2 = pnand %p2445_p0, %p487_p1 }
   0xd   : > { %p2577_p4 = pneg %p488_p2  ;;  %574 = sbr.rel (%p488_p2) target bundleno = 1949 (0x79d), region = 100 }
   0xf   : > { %s553_s2 = sshll.u32 %s4035_s19, 4  ;;  %p2578_p5 = pnand %p2581_p3, %p2577_p4  ;;  %s554_s2 = int_to_ptr.vmem [resolvable:$true] %s553_s2 }
  0x11   : > { %2580 = dma.vmem_to_smem (!%p2578_p5), %s554_s2, 16, %s2826_s25, [#allocation3]  }
  0x12   : > { %2819 = dma.done.wait (%p2581_p3), [#allocation3], 16  }
  0x13   : > { %2821 = vsyncadd (%p2581_p3), [#allocation3], 4294967280 }
  0x14   : > { %581 = sfence }
  0x15   : > { %s4036_s27 = sld [smem:[#allocation8_spill]]  ;;  %p634_p6 = scmp.lt.s32.totalorder %s2443_s22, 1  ;;  %v2827_v2 = vmov 0   ;;  %vm661_vm0 = vcmask 130048   ;;  %v857_v14 = vld [vmem:[%s4002_s10] sm:$0xff]  ;;  %v858_v15 = vld [vmem:[%s4002_s10 + $0x8] sm:$0xff] }
  0x16   : > { %s4037_s29 = sld [smem:[#allocation9_spill]]  ;;  %2598 = vset.pattern.permute.xlu0 %v2827_v2  ;;  %2599 = vset.pattern.permute.xlu1 %v2827_v2  ;;  %v841_v40 = vld [vmem:[%s4001_s9] sm:$0xff]  ;;  %v842_v50 = vld [vmem:[%s4001_s9 + $0x8] sm:$0xff]  ;;  %s4019_s21 = smov 112  }
  0x17   : > { %s4124_s22 = smov (!%p634_p6, %s2443_s22), 1  ;;  %2600 = vset.pattern.permute.xlu2 %v2827_v2  ;;  %s4038_s23 = sld [smem:[#allocation5_spill]] }
  0x18   : > { %s2569_s30 = sshll.u32 %s4124_s22, 5  ;;  %s4039_s3 = sld [smem:[#allocation7_spill]]  ;;  %845 = vperm.xlu2 %2600, %v841_v40  }
  0x19   : > { %s4044_s26 = sld [smem:[#allocation6_spill]]  ;;  %s4023_s28 = smov 1  }
  0x1a   : > { %s2556_s2 = sld [smem:[#allocation2 + $0x8]]  ;;  %s4085_s25 = smov 16  }
  0x1b   : > { %v693_v0 = vld [vmem:[%s4036_s27] sm:$0xff]  ;;  %v694_v10 = vld [vmem:[%s4036_s27 + $0x8] sm:$0xff]  ;;  %s3857_s4 = sld [smem:[#allocation2]] }
  0x1c   : > { %v709_v1 = vld [vmem:[%s4037_s29] sm:$0xff]  ;;  %697 = vperm.xlu0 %2598, %v693_v0   ;;  %v710_v13 = vld [vmem:[%s4037_s29 + $0x8] sm:$0xff]  ;;  %s3861_s0 = sld [smem:[#allocation2 + $0x2]] }
  0x1d   : > { %713 = vperm.xlu1 %2599, %v709_v1   ;;  %s638_s24 = scalar_lea.vmem %s4038_s23, %s2569_s30  ;;  %s4021_s23 = smov 16  }
  0x1e   : > { %v656_v3 = vld [vmem:[%s4039_s3] sm:$0xff]  ;;  %v657_v4 = vld [vmem:[%s4039_s3 + $0x8] sm:$0xff]  ;;  %v654_v6 = vld [vmem:[%s638_s24 + $0x10] sm:$0xff]  ;;  %s3859_s30 = sld [smem:[#allocation2 + $0x1]] }
  0x1f   : > { %v652_v5 = vld [vmem:[%s638_s24] sm:$0xff]  ;;  %v653_v7 = vld [vmem:[%s638_s24 + $0x8] sm:$0xff]  ;;  %v655_v9 = vld [vmem:[%s638_s24 + $0x18] sm:$0xff]  ;;  %v658_v12 = vpack.c.bf16 %v657_v4, %v656_v3  ;;  %s4017_s24 = smov 127   ;;  %s3870_s19 = sld [smem:[#allocation2 + $0x4]] }
  0x20   : > { %v2970_v8 = vpack.c.bf16 %v654_v6, %v652_v5  ;;  %v2975_v11 = vpack.c.bf16 %v655_v9, %v653_v7  ;;  %850 = vperm.xlu2 %2600, %v842_v50  }
  0x22   : > { %672 = vmatpush.bf16.msra.mxu0 %v2970_v8  ;;  %686 = vmatpush.bf16.msra.mxu1 %v2975_v11 }
  0x24   : > { %702 = vperm.xlu0 %2598, %v694_v10  }
  0x25   : > { %718 = vperm.xlu1 %2599, %v710_v13   ;;  %2455 = vmatmul.msk.bf16.vlgmr.msra.gmra.mxu0 %vm661_vm0, %v658_v12 }
  0x26   : > { %2456 = vmatmul.msk.bf16.vlgmr.msra.gmra.mxu1 %vm661_vm0, %v658_v12 }
  0x2c   : > { %861 = vperm.xlu0 %2598, %v857_v14  }
  0x2d   : > { %866 = vperm.xlu1 %2599, %v858_v15  }
  0x8e   : > { %v698_v16 = vpop.permute.xlu0 %697 }
  0x8f   : > { %v714_v17 = vpop.permute.xlu1 %713 }
  0x96   : > { %v703_v26 = vpop.permute.xlu0 %702 }
  0x97   : > { %v719_v30 = vpop.permute.xlu1 %718 }
  0xa2   : > { %v674_v18 = vpop.f32.mrf.mxu0 }
  0xa3   : > { %v705_v19 = vmul.f32 %v698_v16, %v674_v18  ;;  %v688_v20 = vpop.f32.mrf.mxu1 }
  0xa4   : > { %v706_v21 = vmul.f32 %v698_v16, %v688_v20 }
  0xa5   : > { %v2990_v22 = vadd.f32 %v714_v17, %v705_v19 }
  0xa6   : > { %v2992_v23 = vadd.f32 %v714_v17, %v706_v21 }
  0xa7   : > { %v2457_v24 = vmul.f32 -1.442695, %v2990_v22 }
  0xa8   : > { %v2458_v25 = vmul.f32 -1.442695, %v2992_v23 }
  0xa9   : > { %2681 = vpow2.f32 %v2457_v24 }
  0xaa   : > { %2683 = vpow2.f32 %v2458_v25  ;;  %v676_v27 = vpop.f32.mrf.mxu0 }
  0xab   : > { %v707_v28 = vmul.f32 %v703_v26, %v676_v27  ;;  %v690_v29 = vpop.f32.mrf.mxu1 }
  0xac   : > { %v708_v31 = vmul.f32 %v703_v26, %v690_v29  ;;  %v805_v29 = vld [vmem:[%s4000_s8] sm:$0xff] }
  0xad   : > { %v2996_v32 = vadd.f32 %v719_v30, %v707_v28 }
  0xae   : > { %v2998_v33 = vadd.f32 %v719_v30, %v708_v31  ;;  %v806_v30 = vld [vmem:[%s4000_s8 + $0x8] sm:$0xff] }
  0xaf   : > { %v2682_v34 = vpop.eup %2681  ;;  %v2459_v35 = vmul.f32 -1.442695, %v2996_v32 }
  0xb0   : > { %v2684_v36 = vpop.eup %2683  ;;  %v737_v37 = vadd.f32 1.0, %v2682_v34  ;;  %v2460_v38 = vmul.f32 -1.442695, %v2998_v33 }
  0xb1   : > { %v3002_v39 = vadd.f32 1.0, %v2684_v36  ;;  %2685 = vpow2.f32 %v2459_v35  ;;  %v807_v36 = vpack.c.bf16 %v806_v30, %v805_v29 }
  0xb2   : > { %2687 = vrcp.f32 %v737_v37  ;;  %vm746_vm2 = vweird.f32 %v737_v37  ;;  %v750_v57 = vand.u32 2147483647, %v737_v37  ;;  %v752_v58 = vand.u32 2147483648, %v737_v37 }
  0xb3   : > { %2689 = vrcp.f32 %v3002_v39  ;;  %vm761_vm3 = vweird.f32 %v3002_v39  ;;  %v765_v62 = vand.u32 2147483647, %v3002_v39  ;;  %v767_v1 = vand.u32 2147483648, %v3002_v39 }
  0xb4   : > { %2691 = vpow2.f32 %v2460_v38  ;;  %vm751_vm7 = vcmp.eq.f32.partialorder %v750_v57, 8.507059e+37  ;;  %v753_v7 = vor.u32 1.1754944e-38, %v752_v58  ;;  %v846_v38 = vpop.permute.xlu2 %845 }
  0xb5   : > { %v768_v20 = vor.u32 1.1754944e-38, %v767_v1  ;;  %vm766_vm13 = vcmp.eq.f32.partialorder %v765_v62, 8.507059e+37 }
  0xb7   : > { %v2686_v41 = vpop.eup %2685 }
  0xb8   : > { %v2688_v42 = vpop.eup %2687  ;;  %v739_v43 = vadd.f32 1.0, %v2686_v41  ;;  %v862_v41 = vpop.permute.xlu0 %861 }
  0xb9   : > { %v2690_v44 = vpop.eup %2689  ;;  %v742_v45 = vmul.f32 %v2688_v42, %v737_v37  ;;  %vm747_vm1 = vweird.f32 %v2688_v42 }
  0xba   : > { %v2692_v46 = vpop.eup %2691  ;;  %2693 = vrcp.f32 %v739_v43  ;;  %v757_v49 = vmul.f32 %v2690_v44, %v3002_v39  ;;  %v782_v61 = vand.u32 2147483648, %v739_v43  ;;  %vm3014_vm4 = vmor %vm746_vm2, %vm747_vm1  ;;  %vm762_vm5 = vweird.f32 %v2690_v44 }
  0xbb   : > { %v740_v47 = vadd.f32 1.0, %v2692_v46  ;;  %v743_v48 = vsub.f32 1.0, %v742_v45  ;;  %v780_v6 = vand.u32 2147483647, %v739_v43  ;;  %vm776_vm8 = vweird.f32 %v739_v43  ;;  %vm3023_vm9 = vmor %vm761_vm3, %vm762_vm5 }
  0xbc   : > { %v758_v52 = vsub.f32 1.0, %v757_v49  ;;  %v783_v12 = vor.u32 1.1754944e-38, %v782_v61  ;;  %v851_v45 = vpop.permute.xlu2 %850  ;;  %v867_v49 = vpop.permute.xlu1 %866 }
  0xbd   : > { %2695 = vrcp.f32 %v740_v47  ;;  %v744_v51 = vmul.f32 %v2688_v42, %v743_v48  ;;  %v795_v14 = vand.u32 2147483647, %v740_v47  ;;  %v797_v15 = vand.u32 2147483648, %v740_v47 }
  0xbe   : > { %v759_v54 = vmul.f32 %v2690_v44, %v758_v52  ;;  %vm781_vm12 = vcmp.eq.f32.partialorder %v780_v6, 8.507059e+37  ;;  %vm791_vm14 = vweird.f32 %v740_v47 }
  0xbf   : > { %v745_v55 = vadd.f32 %v2688_v42, %v744_v51  ;;  %v798_v28 = vor.u32 1.1754944e-38, %v797_v15  ;;  %vm796_vm1 = vcmp.eq.f32.partialorder %v795_v14, 8.507059e+37 }
  0xc0   : > { %v2694_v53 = vpop.eup %2693  ;;  %v760_v0 = vadd.f32 %v2690_v44, %v759_v54 }
  0xc1   : > { %v772_v56 = vmul.f32 %v2694_v53, %v739_v43  ;;  %v749_v4 = vsel %vm3014_vm4, %v2688_v42, %v745_v55  ;;  %vm777_vm6 = vweird.f32 %v2694_v53 }
  0xc2   : > { %v754_v16 = vsel %vm751_vm7, %v753_v7, %v749_v4  ;;  %vm778_vm10 = vmor %vm776_vm8, %vm777_vm6  ;;  %v764_v17 = vsel %vm3023_vm9, %v2690_v44, %v760_v0 }
  0xc3   : > { %v2696_v59 = vpop.eup %2695  ;;  %v773_v60 = vsub.f32 1.0, %v772_v56  ;;  %v3030_v25 = vmul.f32 %v754_v16, %v2990_v22  ;;  %v769_v27 = vsel %vm766_vm13, %v768_v20, %v764_v17 }
  0xc4   : > { %v787_v3 = vmul.f32 %v2696_v59, %v740_v47  ;;  %vm792_vm11 = vweird.f32 %v2696_v59 }
  0xc5   : > { %v774_v5 = vmul.f32 %v2694_v53, %v773_v60  ;;  %vm793_vm15 = vmor %vm791_vm14, %vm792_vm11 }
  0xc6   : > { %v788_v9 = vsub.f32 1.0, %v787_v3 }
  0xc7   : > { %v775_v10 = vadd.f32 %v2694_v53, %v774_v5 }
  0xc8   : > { %v789_v18 = vmul.f32 %v2696_v59, %v788_v9 }
  0xc9   : > { %v779_v19 = vsel %vm778_vm10, %v2694_v53, %v775_v10 }
  0xca   : > { %v784_v21 = vsel %vm781_vm12, %v783_v12, %v779_v19  ;;  %v790_v24 = vadd.f32 %v2696_v59, %v789_v18 }
  0xcb   : > { %v3033_v26 = vmul.f32 %v784_v21, %v2996_v32  ;;  %v3044_v32 = vmul.f32 %v769_v27, %v2992_v23 }
  0xcc   : > { %v794_v31 = vsel %vm793_vm15, %v2696_v59, %v790_v24 }
  0xcd   : > { %v808_v22 = vpack.c.bf16 %v3033_v26, %v3030_v25  ;;  %v799_v34 = vsel %vm796_vm1, %v798_v28, %v794_v31 }
  0xce   : > { %v3047_v35 = vmul.f32 %v799_v34, %v2998_v33 }
  0xcf   : > { %820 = vmatpush.bf16.msra.mxu2 %v808_v22 }
  0xd0   : > { %v809_v37 = vpack.c.bf16 %v3047_v35, %v3044_v32 }
  0xd2   : > { %834 = vmatpush.bf16.msra.mxu3 %v809_v37  ;;  %2461 = vmatmul.msk.bf16.vlgmr.msra.gmra.mxu2 %vm661_vm0, %v807_v36 }
  0xd5   : > { %2462 = vmatmul.msk.bf16.vlgmr.msra.gmra.mxu3 %vm661_vm0, %v807_v36 }
 0x155   : > { %v822_v39 = vpop.f32.mrf.mxu2 }
 0x156   : > { %v853_v40 = vmul.f32 %v846_v38, %v822_v39 }
 0x158   : > { %v869_v42 = vadd.f32 %v862_v41, %v853_v40  ;;  %v836_v23 = vpop.f32.mrf.mxu3 }
 0x159   : > { %v854_v43 = vmul.f32 %v846_v38, %v836_v23 }
 0x15a   : > { %v2463_v44 = vmul.f32 -1.442695, %v869_v42 }
 0x15b   : > { %v3053_v33 = vadd.f32 %v862_v41, %v854_v43 }
 0x15c   : > { %2697 = vpow2.f32 %v2463_v44 }
 0x15d   : > { %v2464_v46 = vmul.f32 -1.442695, %v3053_v33  ;;  %v824_v47 = vpop.f32.mrf.mxu2 }
 0x15e   : > { %v855_v48 = vmul.f32 %v851_v45, %v824_v47 }
 0x15f   : > { %2699 = vpow2.f32 %v2464_v46 }
 0x160   : > { %v3056_v50 = vadd.f32 %v867_v49, %v855_v48  ;;  %v838_v51 = vpop.f32.mrf.mxu3 }
 0x161   : > { %v856_v52 = vmul.f32 %v851_v45, %v838_v51 }
 0x162   : > { %v2698_v53 = vpop.eup %2697  ;;  %v2465_v54 = vmul.f32 -1.442695, %v3056_v50 }
 0x163   : > { %v885_v55 = vadd.f32 1.0, %v2698_v53  ;;  %v3059_v56 = vadd.f32 %v867_v49, %v856_v52 }
 0x164   : > { %2701 = vpow2.f32 %v2465_v54 }
 0x165   : > { %v2700_v57 = vpop.eup %2699  ;;  %2703 = vrcp.f32 %v885_v55  ;;  %v2466_v59 = vmul.f32 -1.442695, %v3059_v56  ;;  %v900_v4 = vand.u32 2147483648, %v885_v55  ;;  %v898_v7 = vand.u32 2147483647, %v885_v55 }
 0x166   : > { %v886_v58 = vadd.f32 1.0, %v2700_v57  ;;  %vm894_vm3 = vweird.f32 %v885_v55 }
 0x167   : > { %v901_v15 = vor.u32 1.1754944e-38, %v900_v4  ;;  %vm899_vm6 = vcmp.eq.f32.partialorder %v898_v7, 8.507059e+37 }
 0x168   : > { %2705 = vrcp.f32 %v886_v58  ;;  %v915_v13 = vand.u32 2147483648, %v886_v58  ;;  %v913_v17 = vand.u32 2147483647, %v886_v58  ;;  %vm909_vm7 = vweird.f32 %v886_v58 }
 0x169   : > { %2707 = vpow2.f32 %v2466_v59 }
 0x16a   : > { %v2702_v60 = vpop.eup %2701  ;;  %v916_v24 = vor.u32 1.1754944e-38, %v915_v13  ;;  %vm914_vm9 = vcmp.eq.f32.partialorder %v913_v17, 8.507059e+37 }
 0x16b   : > { %v2704_v61 = vpop.eup %2703  ;;  %v887_v62 = vadd.f32 1.0, %v2702_v60 }
 0x16c   : > { %v890_v63 = vmul.f32 %v2704_v61, %v885_v55  ;;  %vm895_vm2 = vweird.f32 %v2704_v61 }
 0x16d   : > { %2709 = vrcp.f32 %v887_v62  ;;  %vm896_vm4 = vmor %vm894_vm3, %vm895_vm2  ;;  %v930_v30 = vand.u32 2147483648, %v887_v62  ;;  %v928_v36 = vand.u32 2147483647, %v887_v62  ;;  %vm924_vm11 = vweird.f32 %v887_v62 }
 0x16e   : > { %v2706_v0 = vpop.eup %2705  ;;  %v891_v1 = vsub.f32 1.0, %v890_v63 }
 0x16f   : > { %v2708_v3 = vpop.eup %2707  ;;  %v905_v5 = vmul.f32 %v2706_v0, %v886_v58  ;;  %vm910_vm5 = vweird.f32 %v2706_v0  ;;  %v931_v40 = vor.u32 1.1754944e-38, %v930_v30  ;;  %vm929_vm13 = vcmp.eq.f32.partialorder %v928_v36, 8.507059e+37 }
 0x170   : > { %v892_v6 = vmul.f32 %v2704_v61, %v891_v1  ;;  %v888_v9 = vadd.f32 1.0, %v2708_v3  ;;  %vm911_vm8 = vmor %vm909_vm7, %vm910_vm5  ;;  %v1413_v1 = vld [vmem:[%s3999_s7] sm:$0xff] }
 0x171   : > { %v906_v10 = vsub.f32 1.0, %v905_v5  ;;  %v1264_v5 = vld [vmem:[%s4005_s13 + $0x8] sm:$0xff] }
 0x172   : > { %v893_v12 = vadd.f32 %v2704_v61, %v892_v6  ;;  %2711 = vrcp.f32 %v888_v9  ;;  %v945_v43 = vand.u32 2147483648, %v888_v9  ;;  %v943_v46 = vand.u32 2147483647, %v888_v9 }
 0x173   : > { %v2710_v14 = vpop.eup %2709  ;;  %v907_v16 = vmul.f32 %v2706_v0, %v906_v10  ;;  %vm939_vm15 = vweird.f32 %v888_v9 }
 0x174   : > { %v897_v18 = vsel %vm896_vm4, %v2704_v61, %v893_v12  ;;  %v920_v19 = vmul.f32 %v2710_v14, %v887_v62  ;;  %vm925_vm10 = vweird.f32 %v2710_v14  ;;  %v946_v48 = vor.u32 1.1754944e-38, %v945_v43 }
 0x175   : > { %v902_v20 = vsel %vm899_vm6, %v901_v15, %v897_v18  ;;  %v908_v21 = vadd.f32 %v2706_v0, %v907_v16  ;;  %vm926_vm12 = vmor %vm924_vm11, %vm925_vm10  ;;  %vm944_vm2 = vcmp.eq.f32.partialorder %v943_v46, 8.507059e+37  ;;  %vm1096_vm4 = vcmask 916480  }
 0x176   : > { %v921_v27 = vsub.f32 1.0, %v920_v19  ;;  %v3062_v28 = vmul.f32 %v902_v20, %v869_v42 }
 0x177   : > { %v912_v29 = vsel %vm911_vm8, %v2706_v0, %v908_v21 }
 0x178   : > { %v2712_v31 = vpop.eup %2711  ;;  %v917_v22 = vsel %vm914_vm9, %v916_v24, %v912_v29  ;;  %v922_v34 = vmul.f32 %v2710_v14, %v921_v27 }
 0x179   : > { %v3065_v37 = vmul.f32 %v917_v22, %v3053_v33  ;;  %v935_v38 = vmul.f32 %v2712_v31, %v888_v9  ;;  %vm940_vm14 = vweird.f32 %v2712_v31 }
 0x17a   : > { %v923_v39 = vadd.f32 %v2710_v14, %v922_v34  ;;  %vm941_vm1 = vmor %vm939_vm15, %vm940_vm14  ;;  %vm4028_vm14 = vcmask 7168  }
 0x17b   : > { %v936_v41 = vsub.f32 1.0, %v935_v38  ;;  %v2601_v42 = vpack.i.bf16 %v3065_v37, %v3062_v28 }
 0x17c   : > { %v927_v23 = vsel %vm926_vm12, %v2710_v14, %v923_v39 }
 0x17d   : > { %v932_v44 = vsel %vm929_vm13, %v931_v40, %v927_v23  ;;  %v937_v45 = vmul.f32 %v2712_v31, %v936_v41  ;;  %2602 = vrot.lane.b32.xlu2 %v2601_v42, %s4019_s21  ;;  %v1164_v23 = vld [vmem:[%s4003_s11] sm:$0xff] }
 0x17e   : > { %v3071_v33 = vmul.f32 %v932_v44, %v3056_v50 }
 0x17f   : > { %v938_v47 = vadd.f32 %v2712_v31, %v937_v45 }
 0x180   : > { %v3075_v49 = vpack.i.bf16 %v3071_v33, %v3062_v28  ;;  %v1178_v51 = vpack.c.bf16 %v3071_v33, %v3062_v28 }
 0x181   : > { %v942_v52 = vsel %vm941_vm1, %v2712_v31, %v938_v47 }
 0x182   : > { %v947_v53 = vsel %vm944_vm2, %v946_v48, %v942_v52 }
 0x183   : > { %v3080_v54 = vmul.f32 %v947_v53, %v3059_v56  ;;  %v3100_v56 = vld [vmem:[%s4044_s26 + $0x1] ss:$2 sm:$0x3] }
 0x184   : > { %vm651_vm3 = vcmp.le.f32.partialorder %v3100_v56, 14.0  ;;  %vm650_vm5 = vcmp.ge.f32.partialorder %v3100_v56, 1.0 }
 0x185   : > { %v3084_v50 = vpack.i.bf16 %v3080_v54, %v3065_v37  ;;  %2617 = vrot.lane.b32.xlu2 %v3075_v49, %s4021_s23  ;;  %v2606_v55 = vpack.i.bf16 %v3080_v54, %v3071_v33  ;;  %v1179_v57 = vpack.c.bf16 %v3080_v54, %v3065_v37  ;;  %v1107_v59 = vsel %vm651_vm3, 1, %v2827_v2 }
 0x186   : > { %v1109_v62 = vperm.slane %v1107_v59, 1  ;;  %v1108_v63 = vperm.slane %v1107_v59, 0  ;;  %v975_v6 = vsel %vm650_vm5, 1, %v2827_v2  ;;  %v1247_v59 = vld [vmem:[%s4004_s12] sm:$0xff] }
 0x187   : > { %2612 = vrot.lane.b32.xlu1 %v3084_v50, %s4021_s23  ;;  %2607 = vrot.lane.b32.xlu0 %v2606_v55, %s4019_s21  ;;  %v976_v18 = vperm.slane %v975_v6, 0  ;;  %v977_v19 = vperm.slane %v975_v6, 1  ;;  %v1598_v6 = vld [vmem:[%s4008_s16 + $0x10] sm:$0xff]  ;;  %s4086_s21 = smov 112   ;;  %s4087_s23 = smov 1  }
 0x188   : > { %vm3108_vm6 = vcmp.eq.s32.totalorder %v1109_v62, 1  ;;  %vm3113_vm7 = vcmp.eq.s32.totalorder %v1108_v63, 1  ;;  %v1398_v62 = vld [vmem:[%s3998_s6 + $0x8] sm:$0xff]  ;;  %v1263_v63 = vld [vmem:[%s4005_s13] sm:$0xff] }
 0x189   : > { %vm2467_vm8 = vmpackc.low %vm3113_vm7, %vm3113_vm7  ;;  %vm3155_vm10 = vcmp.eq.s32.totalorder %v976_v18, 1  ;;  %vm3159_vm11 = vcmp.eq.s32.totalorder %v977_v19, 1 }
 0x18a   : > { %vm2492_vm9 = vmpackc.low %vm3108_vm6, %vm3108_vm6 }
 0x18d   : > { %2622 = vrot.lane.b32.xlu2 %v2601_v42, %s4017_s24 }
 0x18f   : > { %2627 = vrot.lane.b32.xlu0 %v2606_v55, %s4017_s24 }
 0x1d7   : > { %v2603_v58 = vpop.permute.xlu2 %2602 }
 0x1d8   : > { %v2605_v60 = vunpack.i.h.bf16 %v2603_v58  ;;  %v2604_v61 = vunpack.i.l.bf16 %v2603_v58 }
 0x1da   : > { %v1105_v0 = vsel %vm1096_vm4, %v2605_v60, %v2604_v61  ;;  %v1097_v4 = vsel %vm1096_vm4, %v2604_v61, %v2605_v60  ;;  %v1248_v61 = vld [vmem:[%s4004_s12 + $0x8] sm:$0xff] }
 0x1db   : > { %v1113_v10 = vsel %vm3108_vm6, %v1105_v0, 0.0  ;;  %v1112_v17 = vsel %vm3113_vm7, %v1097_v4, 0.0 }
 0x1dc   : > { %v2641_v48 = vpack.i.bf16 %v1113_v10, %v1112_v17 }
 0x1df   : > { %v2618_v3 = vpop.permute.xlu2 %2617 }
 0x1e0   : > { %v2619_v12 = vunpack.i.l.bf16 %v2618_v3  ;;  %v2620_v20 = vunpack.i.h.bf16 %v2618_v3  ;;  %v1566_v3 = vld [vmem:[%s4007_s15 + $0x10] sm:$0xff] }
 0x1e7   : > { %v2623_v18 = vpop.permute.xlu2 %2622 }
 0x1f9   : > { %v2613_v7 = vpop.permute.xlu1 %2612  ;;  %v2608_v9 = vpop.permute.xlu0 %2607 }
 0x1fa   : > { %v2614_v13 = vunpack.i.l.bf16 %v2613_v7  ;;  %v2610_v14 = vunpack.i.h.bf16 %v2608_v9  ;;  %v2609_v15 = vunpack.i.l.bf16 %v2608_v9  ;;  %v2615_v16 = vunpack.i.h.bf16 %v2613_v7  ;;  %v1597_v7 = vld [vmem:[%s4008_s16 + $0x8] sm:$0xff]  ;;  %v1599_v9 = vld [vmem:[%s4008_s16 + $0x18] sm:$0xff] }
 0x1fc   : > { %v1098_v21 = vsel %vm1096_vm4, %v2609_v15, %v2610_v14  ;;  %v1106_v24 = vsel %vm1096_vm4, %v2610_v14, %v2609_v15  ;;  %v3133_v27 = vsel %vm661_vm0, %v2614_v13, %v2619_v12  ;;  %v3140_v39 = vsel %vm661_vm0, %v2619_v12, %v2614_v13  ;;  %v1564_v12 = vld [vmem:[%s4007_s15] sm:$0xff] }
 0x1fd   : > { %v2468_v29 = vpack.c.bf16 %v1098_v21, %v1097_v4  ;;  %v2493_v30 = vpack.c.bf16 %v1106_v24, %v1105_v0  ;;  %v1115_v31 = vsel %vm3108_vm6, %v1106_v24, 0.0  ;;  %v1114_v22 = vsel %vm3113_vm7, %v1098_v21, 0.0  ;;  %v1567_v0 = vld [vmem:[%s4007_s15 + $0x18] sm:$0xff]  ;;  %v1565_v4 = vld [vmem:[%s4007_s15 + $0x8] sm:$0xff] }
 0x1fe   : > { %v2631_v34 = vpack.i.bf16 %v1115_v31, %v1113_v10  ;;  %v2656_v36 = vpack.i.bf16 %v1115_v31, %v1114_v22  ;;  %v2636_v38 = vpack.i.bf16 %v1114_v22, %v1112_v17  ;;  %v3148_v40 = vsel %vm661_vm0, %v2620_v20, %v2615_v16  ;;  %v1596_v10 = vld [vmem:[%s4008_s16] sm:$0xff] }
 0x1ff   : > { %2469 = vmatpush.bf16.msk.msrb.mxu0 %vm2467_vm8, %v2468_v29  ;;  %2494 = vmatpush.bf16.msk.msrb.mxu2 %vm2492_vm9, %v2493_v30  ;;  %v3151_v41 = vsel %vm661_vm0, %v2615_v16, %v2620_v20  ;;  %v2508_v44 = vpack.c.bf16 %v3148_v40, %v3140_v39  ;;  %v980_v45 = vsel %vm3155_vm10, %v3133_v27, 0.0  ;;  %v981_v46 = vsel %vm3159_vm11, %v3140_v39, 0.0  ;;  %v3240_v13 = vld [vmem:[%s4044_s26] ss:$2 sm:$0x3] }
 0x200   : > { %2632 = vrot.lane.b32.xlu0 %v2631_v34, %s4023_s28  ;;  %2657 = vrot.lane.b32.xlu2 %v2656_v36, %s4017_s24  ;;  %v2483_v43 = vpack.c.bf16 %v3151_v41, %v3133_v27  ;;  %v2661_v47 = vpack.i.bf16 %v981_v46, %v980_v45  ;;  %v982_v52 = vsel %vm3155_vm10, %v3151_v41, 0.0  ;;  %v983_v53 = vsel %vm3159_vm11, %v3148_v40, 0.0 }
 0x201   : > { %2637 = vrot.lane.b32.xlu1 %v2636_v38, %s4023_s28  ;;  %v2666_v55 = vpack.i.bf16 %v983_v53, %v982_v52  ;;  %v2676_v58 = vpack.i.bf16 %v982_v52, %v980_v45  ;;  %v2671_v60 = vpack.i.bf16 %v983_v53, %v981_v46  ;;  %vm4026_vm12 = vcmp.ge.f32.partialorder %v3240_v13, 1.0  ;;  %v2628_v14 = vpop.permute.xlu0 %2627 }
 0x202   : > { %v1007_v15 = vsel %vm4026_vm12, 1, %v2827_v2  ;;  %vm4025_vm13 = vcmp.le.f32.partialorder %v3240_v13, 14.0  ;;  %v2630_v22 = vunpack.i.h.bf16 %v2628_v14  ;;  %v2629_v34 = vunpack.i.l.bf16 %v2628_v14  ;;  %v1167_v14 = vld [vmem:[%s4003_s11 + $0x18] sm:$0xff] }
 0x203   : > { %v1008_v16 = vperm.slane %v1007_v15, 0  ;;  %v1035_v17 = vsel %vm4025_vm13, 1, %v2827_v2  ;;  %v1009_v19 = vperm.slane %v1007_v15, 1  ;;  %v2625_v45 = vunpack.i.h.bf16 %v2623_v18 }
 0x204   : > { %v1036_v20 = vperm.slane %v1035_v17, 0  ;;  %v1037_v31 = vperm.slane %v1035_v17, 1  ;;  %v2624_v46 = vunpack.i.l.bf16 %v2623_v18  ;;  %vm4027_vm8 = vcmask 1039360  }
 0x205   : > { %vm1010_vm15 = vcmp.eq.s32.totalorder %v1008_v16, 1  ;;  %vm1011_vm1 = vcmp.eq.s32.totalorder %v1009_v19, 1 }
 0x206   : > { %vm3250_vm2 = vmpackc.low %vm1010_vm15, %vm1010_vm15  ;;  %vm1038_vm6 = vcmp.eq.s32.totalorder %v1036_v20, 1  ;;  %vm1039_vm9 = vcmp.eq.s32.totalorder %v1037_v31, 1 }
 0x207   : > { %vm3258_vm7 = vmpackc.low %vm1011_vm1, %vm1011_vm1 }
 0x208   : > { %2647 = vrot.lane.b32.xlu0 %v3084_v50, %s4023_s28  ;;  %2662 = vrot.lane.b32.xlu2 %v2661_v47, %s4017_s24  ;;  %v1397_v50 = vld [vmem:[%s3998_s6] sm:$0xff]  ;;  %vm3268_vm15 = vmpackc.low %vm1038_vm6, %vm1038_vm6 }
 0x209   : > { %2642 = vrot.lane.b32.xlu1 %v2641_v48, %s4017_s24  ;;  %vm3274_vm1 = vmpackc.low %vm1039_vm9, %vm1039_vm9 }
 0x20a   : > { %vm2482_vm6 = vmpackc.low %vm3155_vm10, %vm3155_vm10 }
 0x20b   : > { %vm2507_vm9 = vmpackc.low %vm3159_vm11, %vm3159_vm11 }
 0x210   : > { %2667 = vrot.lane.b32.xlu0 %v2666_v55, %s4017_s24  ;;  %2677 = vrot.lane.b32.xlu2 %v2676_v58, %s4023_s28  ;;  %s4088_s24 = smov 127  }
 0x211   : > { %2652 = vrot.lane.b32.xlu1 %v3075_v49, %s4023_s28  ;;  %v1414_v49 = vld [vmem:[%s3999_s7 + $0x8] sm:$0xff] }
 0x218   : > { %1401 = vperm.xlu0 %2598, %v1397_v50   ;;  %1251 = vperm.xlu2 %2600, %v1247_v59  }
 0x219   : > { %2672 = vrot.lane.b32.xlu1 %v2671_v60, %s4023_s28  ;;  %v1075_v60 = vsel %vm4027_vm8, %v2629_v34, %v2630_v22  ;;  %s3863_s28 = sld [smem:[#allocation2 + $0x3]] }
 0x220   : > { %1256 = vperm.xlu0 %2598, %v1248_v61   ;;  %1422 = vperm.xlu2 %2600, %v1414_v49   ;;  %v1083_v61 = vsel %vm4027_vm8, %v2630_v22, %v2629_v34 }
 0x221   : > { %1406 = vperm.xlu1 %2599, %v1398_v62  }
 0x228   : > { %1267 = vperm.xlu0 %2598, %v1263_v63   ;;  %1585 = vperm.xlu2 %2600, %v1567_v0  }
 0x229   : > { %1417 = vperm.xlu1 %2599, %v1413_v1   ;;  %v1074_v1 = vsel %vm4027_vm8, %v2624_v46, %v2625_v45 }
 0x230   : > { %1580 = vperm.xlu0 %2598, %v1566_v3   ;;  %1575 = vperm.xlu2 %2600, %v1565_v4   ;;  %v1082_v3 = vsel %vm4027_vm8, %v2625_v45, %v2624_v46 }
 0x231   : > { %1272 = vperm.xlu1 %2599, %v1264_v5  }
 0x238   : > { %1612 = vperm.xlu0 %2598, %v1598_v6   ;;  %1607 = vperm.xlu2 %2600, %v1597_v7   ;;  %v2474_v6 = vpack.c.bf16 %v1075_v60, %v1074_v1  ;;  %v2499_v7 = vpack.c.bf16 %v1083_v61, %v1082_v3 }
 0x239   : > { %1617 = vperm.xlu1 %2599, %v1599_v9  }
 0x240   : > { %1602 = vperm.xlu0 %2598, %v1596_v10  }
 0x241   : > { %1570 = vperm.xlu1 %2599, %v1564_v12   ;;  %v1165_v12 = vld [vmem:[%s4003_s11 + $0x8] sm:$0xff] }
 0x25a   : > { %v2658_v58 = vpop.permute.xlu2 %2657 }
 0x25b   : > { %v2660_v62 = vunpack.i.h.bf16 %v2658_v58  ;;  %v2659_v63 = vunpack.i.l.bf16 %v2658_v58 }
 0x25d   : > { %v1151_v16 = vsel %vm4027_vm8, %v2659_v63, %v2660_v62  ;;  %v1159_v18 = vsel %vm4027_vm8, %v2660_v62, %v2659_v63  ;;  %v1363_v62 = vld [vmem:[%s3997_s5] sm:$0xff]  ;;  %v1364_v63 = vld [vmem:[%s3997_s5 + $0x8] sm:$0xff] }
 0x25e   : > { %v1365_v49 = vpack.c.bf16 %v1364_v63, %v1363_v62 }
 0x272   : > { %v2633_v21 = vpop.permute.xlu0 %2632 }
 0x273   : > { %v2635_v24 = vunpack.i.h.bf16 %v2633_v21  ;;  %v2634_v29 = vunpack.i.l.bf16 %v2633_v21  ;;  %v2638_v30 = vpop.permute.xlu1 %2637  ;;  %v1169_v21 = vpack.c.bf16 %v1167_v14, %v1165_v12 }
 0x274   : > { %v2640_v36 = vunpack.i.h.bf16 %v2638_v30  ;;  %v2639_v38 = vunpack.i.l.bf16 %v2638_v30 }
 0x276   : > { %v1136_v2 = vsel %vm4028_vm14, %v2634_v29, %v2639_v38  ;;  %v1137_v48 = vsel %vm4028_vm14, %v2635_v24, %v2640_v36  ;;  %v1130_v52 = vsel %vm4028_vm14, %v2639_v38, %v2634_v29  ;;  %v1131_v53 = vsel %vm4028_vm14, %v2640_v36, %v2635_v24  ;;  %v2663_v24 = vpop.permute.xlu2 %2662 }
 0x277   : > { %v2471_v50 = vpack.c.bf16 %v1137_v48, %v1136_v2  ;;  %v2496_v59 = vpack.c.bf16 %v1131_v53, %v1130_v52  ;;  %v2665_v36 = vunpack.i.h.bf16 %v2663_v24  ;;  %v2664_v37 = vunpack.i.l.bf16 %v2663_v24 }
 0x279   : > { %2472 = vmatpush.bf16.msk.msrb.mxu0 %vm3250_vm2, %v2471_v50  ;;  %2497 = vmatpush.bf16.msk.msrb.mxu2 %vm3258_vm7, %v2496_v59  ;;  %v1025_v48 = vsel %vm4027_vm8, %v2664_v37, %v2665_v36  ;;  %v1033_v52 = vsel %vm4027_vm8, %v2665_v36, %v2664_v37 }
 0x27a   : > { %v2648_v0 = vpop.permute.xlu0 %2647 }
 0x27b   : > { %v2643_v5 = vpop.permute.xlu1 %2642  ;;  %v2650_v30 = vunpack.i.h.bf16 %v2648_v0  ;;  %v2649_v31 = vunpack.i.l.bf16 %v2648_v0 }
 0x27c   : > { %v2645_v9 = vunpack.i.h.bf16 %v2643_v5  ;;  %v2644_v10 = vunpack.i.l.bf16 %v2643_v5 }
 0x27d   : > { %2475 = vmatpush.bf16.msk.msrb.mxu0 %vm3268_vm15, %v2474_v6  ;;  %2500 = vmatpush.bf16.msk.msrb.mxu2 %vm3274_vm1, %v2499_v7  ;;  %v1166_v6 = vld [vmem:[%s4003_s11 + $0x10] sm:$0xff] }
 0x27e   : > { %v1150_v15 = vsel %vm4027_vm8, %v2644_v10, %v2645_v9  ;;  %v1158_v17 = vsel %vm4027_vm8, %v2645_v9, %v2644_v10  ;;  %v2678_v53 = vpop.permute.xlu2 %2677  ;;  %v1168_v41 = vpack.c.bf16 %v1166_v6, %v1164_v23 }
 0x27f   : > { %v2489_v19 = vpack.c.bf16 %v1151_v16, %v1150_v15  ;;  %v2514_v20 = vpack.c.bf16 %v1159_v18, %v1158_v17  ;;  %v2680_v0 = vunpack.i.h.bf16 %v2678_v53  ;;  %v2679_v1 = vunpack.i.l.bf16 %v2678_v53 }
 0x281   : > { %1194 = vmatpush.bf16.msrb.mxu0 %v1178_v51  ;;  %2490 = vmatpush.bf16.msk.msrb.mxu1 %vm3268_vm15, %v2489_v19 }
 0x282   : > { %1222 = vmatpush.bf16.msrb.mxu2 %v1179_v57  ;;  %2515 = vmatpush.bf16.msk.msrb.mxu3 %vm3274_vm1, %v2514_v20  ;;  %v2668_v29 = vpop.permute.xlu0 %2667 }
 0x283   : > { %v2653_v22 = vpop.permute.xlu1 %2652  ;;  %v2670_v28 = vunpack.i.h.bf16 %v2668_v29  ;;  %v2669_v33 = vunpack.i.l.bf16 %v2668_v29 }
 0x284   : > { %v2655_v51 = vunpack.i.h.bf16 %v2653_v22  ;;  %v2654_v34 = vunpack.i.l.bf16 %v2653_v22  ;;  %2491 = vmatmul.msk.bf16.vlgmr.msrb.gmra.mxu1 %vm661_vm0, %v1169_v21 }
 0x285   : > { %1376 = vmatpush.bf16.msra.mxu1 %v2970_v8  ;;  %2516 = vmatmul.msk.bf16.vlgmr.msrb.gmra.mxu3 %vm661_vm0, %v1169_v21  ;;  %v1026_v46 = vsel %vm4027_vm8, %v2669_v33, %v2670_v28  ;;  %v1034_v2 = vsel %vm4027_vm8, %v2670_v28, %v2669_v33 }
 0x286   : > { %1390 = vmatpush.bf16.msra.mxu3 %v2975_v11  ;;  %v1060_v54 = vsel %vm4028_vm14, %v2649_v31, %v2654_v34  ;;  %v1061_v57 = vsel %vm4028_vm14, %v2650_v30, %v2655_v51  ;;  %v1054_v38 = vsel %vm4028_vm14, %v2654_v34, %v2649_v31  ;;  %v1055_v8 = vsel %vm4028_vm14, %v2655_v51, %v2650_v30  ;;  %v1252_v14 = vpop.permute.xlu2 %1251 }
 0x287   : > { %v2477_v45 = vpack.c.bf16 %v1061_v57, %v1060_v54  ;;  %v2502_v11 = vpack.c.bf16 %v1055_v8, %v1054_v38  ;;  %v2480_v50 = vpack.c.bf16 %v1026_v46, %v1025_v48  ;;  %v2505_v59 = vpack.c.bf16 %v1034_v2, %v1033_v52 }
 0x289   : > { %2478 = vmatpush.bf16.msk.msrb.mxu0 %vm3250_vm2, %v2477_v45  ;;  %2503 = vmatpush.bf16.msk.msrb.mxu2 %vm3258_vm7, %v2502_v11 }
 0x28a   : > { %v1402_v40 = vpop.permute.xlu0 %1401 }
 0x28b   : > { %v2673_v58 = vpop.permute.xlu1 %2672 }
 0x28c   : > { %v2675_v60 = vunpack.i.h.bf16 %v2673_v58  ;;  %v2674_v61 = vunpack.i.l.bf16 %v2673_v58 }
 0x28d   : > { %2481 = vmatpush.bf16.msk.msrb.mxu0 %vm3268_vm15, %v2480_v50  ;;  %2506 = vmatpush.bf16.msk.msrb.mxu2 %vm3274_vm1, %v2505_v59 }
 0x28e   : > { %v1005_v3 = vsel %vm4028_vm14, %v2674_v61, %v2679_v1  ;;  %v1006_v42 = vsel %vm4028_vm14, %v2675_v60, %v2680_v0  ;;  %v999_v4 = vsel %vm4028_vm14, %v2679_v1, %v2674_v61  ;;  %v1000_v5 = vsel %vm4028_vm14, %v2680_v0, %v2675_v60  ;;  %v1423_v28 = vpop.permute.xlu2 %1422 }
 0x28f   : > { %v2486_v7 = vpack.c.bf16 %v1006_v42, %v1005_v3  ;;  %v2511_v27 = vpack.c.bf16 %v1000_v5, %v999_v4 }
 0x291   : > { %2484 = vmatpush.bf16.msk.msrb.mxu0 %vm2482_vm6, %v2483_v43  ;;  %2509 = vmatpush.bf16.msk.msrb.mxu2 %vm2507_vm9, %v2508_v44 }
 0x292   : > { %v3356_v10 = vpop.permute.xlu0 %1256 }
 0x293   : > { %v1407_v44 = vpop.permute.xlu1 %1406 }
 0x294   : > { %2521 = vmatmul.msk.bf16.vlgmr.msra.gmra.mxu1 %vm661_vm0, %v1365_v49 }
 0x295   : > { %2522 = vmatmul.msk.bf16.vlgmr.msra.gmra.mxu3 %vm661_vm0, %v1365_v49  ;;  %2487 = vmatpush.bf16.msk.msrb.mxu0 %vm3250_vm2, %v2486_v7 }
 0x296   : > { %2512 = vmatpush.bf16.msk.msrb.mxu2 %vm3258_vm7, %v2511_v27 }
 0x298   : > { %1199 = vmatmul.bf16.vlgmr.msrb.gmra.mxu0 %v1168_v41 }
 0x299   : > { %1227 = vmatmul.bf16.vlgmr.msrb.gmra.mxu2 %v1168_v41 }
 0x29a   : > { %v1268_v24 = vpop.permute.xlu0 %1267 }
 0x29b   : > { %v1418_v17 = vpop.permute.xlu1 %1417 }
 0x2a3   : > { %v1273_v52 = vpop.permute.xlu1 %1272 }
 0x301   : > { %v1214_v39 = vpop.f32.mrf.mxu1 }
 0x308   : > { %v1242_v43 = vpop.f32.mrf.mxu3 }
 0x309   : > { %v1216_v9 = vpop.f32.mrf.mxu1 }
 0x310   : > { %v3358_v12 = vpop.f32.mrf.mxu3 }
 0x311   : > { %v1378_v15 = vpop.f32.mrf.mxu1 }
 0x312   : > { %v1409_v16 = vmul.f32 %v1402_v40, %v1378_v15 }
 0x314   : > { %v3360_v47 = vadd.f32 %v1418_v17, %v1409_v16 }
 0x315   : > { %v1200_v18 = vpop.f32.mrf.mxu0 }
 0x316   : > { %v2523_v55 = vmul.f32 -1.442695, %v3360_v47  ;;  %v1215_v19 = vadd.f32 %v1214_v39, %v1200_v18 }
 0x318   : > { %2713 = vpow2.f32 %v2523_v55  ;;  %v1259_v20 = vmul.f32 %v1252_v14, %v1215_v19  ;;  %v1392_v21 = vpop.f32.mrf.mxu3 }
 0x319   : > { %v1410_v29 = vmul.f32 %v1402_v40, %v1392_v21  ;;  %v1380_v30 = vpop.f32.mrf.mxu1 }
 0x31a   : > { %v3363_v31 = vadd.f32 %v1268_v24, %v1259_v20  ;;  %v1411_v22 = vmul.f32 %v1407_v44, %v1380_v30 }
 0x31b   : > { %v3365_v33 = vadd.f32 %v1418_v17, %v1410_v29 }
 0x31c   : > { %v2517_v51 = vmul.f32 -1.442695, %v3363_v31  ;;  %v3368_v34 = vadd.f32 %v1423_v28, %v1411_v22  ;;  %v1228_v36 = vpop.f32.mrf.mxu2 }
 0x31d   : > { %v2524_v37 = vmul.f32 -1.442695, %v3365_v33  ;;  %v1243_v54 = vadd.f32 %v1242_v43, %v1228_v36  ;;  %v1202_v57 = vpop.f32.mrf.mxu0 }
 0x31e   : > { %v2714_v38 = vpop.eup %2713  ;;  %2715 = vpow2.f32 %v2517_v51  ;;  %v2525_v8 = vmul.f32 -1.442695, %v3368_v34  ;;  %v1217_v45 = vadd.f32 %v1216_v9, %v1202_v57 }
 0x31f   : > { %v1441_v11 = vadd.f32 1.0, %v2714_v38  ;;  %2717 = vpow2.f32 %v2524_v37  ;;  %v1260_v46 = vmul.f32 %v1252_v14, %v1243_v54 }
 0x320   : > { %2719 = vpow2.f32 %v2525_v8  ;;  %v1261_v2 = vmul.f32 %v3356_v10, %v1217_v45  ;;  %v1394_v48 = vpop.f32.mrf.mxu3 }
 0x321   : > { %2721 = vrcp.f32 %v1441_v11  ;;  %v3373_v53 = vadd.f32 %v1268_v24, %v1260_v46  ;;  %v1412_v50 = vmul.f32 %v1407_v44, %v1394_v48  ;;  %v1454_v41 = vand.u32 2147483647, %v1441_v11 }
 0x322   : > { %v3375_v58 = vadd.f32 %v1273_v52, %v1261_v2  ;;  %v1456_v9 = vand.u32 2147483648, %v1441_v11  ;;  %vm1450_vm10 = vweird.f32 %v1441_v11 }
 0x323   : > { %v2518_v60 = vmul.f32 -1.442695, %v3373_v53  ;;  %v3378_v61 = vadd.f32 %v1423_v28, %v1412_v50  ;;  %vm3399_vm11 = vcmp.eq.f32.partialorder %v1454_v41, 8.507059e+37 }
 0x324   : > { %v2716_v59 = vpop.eup %2715  ;;  %v2519_v49 = vmul.f32 -1.442695, %v3375_v58  ;;  %v1230_v6 = vpop.f32.mrf.mxu2  ;;  %v1457_v29 = vor.u32 1.1754944e-38, %v1456_v9 }
 0x325   : > { %v2718_v62 = vpop.eup %2717  ;;  %v3380_v63 = vadd.f32 1.0, %v2716_v59  ;;  %2723 = vpow2.f32 %v2518_v60  ;;  %v2526_v42 = vmul.f32 -1.442695, %v3378_v61  ;;  %v1245_v44 = vadd.f32 %v3358_v12, %v1230_v6 }
 0x326   : > { %v2720_v0 = vpop.eup %2719  ;;  %v3382_v1 = vadd.f32 1.0, %v2718_v62 }
 0x327   : > { %v2722_v3 = vpop.eup %2721  ;;  %2725 = vrcp.f32 %v3380_v63  ;;  %v1443_v23 = vadd.f32 1.0, %v2720_v0  ;;  %v1262_v24 = vmul.f32 %v3356_v10, %v1245_v44  ;;  %v1304_v28 = vand.u32 2147483647, %v3380_v63 }
 0x328   : > { %v1446_v4 = vmul.f32 %v2722_v3, %v1441_v11  ;;  %2727 = vrcp.f32 %v3382_v1  ;;  %vm1451_vm2 = vweird.f32 %v2722_v3  ;;  %v1306_v51 = vand.u32 2147483648, %v3380_v63 }
 0x329   : > { %2729 = vpow2.f32 %v2519_v49  ;;  %vm3414_vm7 = vmor %vm1450_vm10, %vm1451_vm2  ;;  %v1469_v10 = vand.u32 2147483647, %v3382_v1  ;;  %v1484_v57 = vand.u32 2147483647, %v1443_v23  ;;  %v1486_v8 = vand.u32 2147483648, %v1443_v23 }
 0x32a   : > { %v1447_v5 = vsub.f32 1.0, %v1446_v4  ;;  %2731 = vpow2.f32 %v2526_v42  ;;  %v3423_v45 = vadd.f32 %v1273_v52, %v1262_v24  ;;  %vm1300_vm1 = vweird.f32 %v3380_v63 }
 0x32b   : > { %v2724_v7 = vpop.eup %2723  ;;  %2733 = vrcp.f32 %v1443_v23  ;;  %vm3427_vm9 = vcmp.eq.f32.partialorder %v1304_v28, 8.507059e+37  ;;  %v1307_v48 = vor.u32 1.1754944e-38, %v1306_v51  ;;  %vm1465_vm10 = vweird.f32 %v3382_v1 }
 0x32c   : > { %v1448_v40 = vmul.f32 %v2722_v3, %v1447_v5  ;;  %v3395_v14 = vadd.f32 1.0, %v2724_v7  ;;  %v1471_v62 = vand.u32 2147483648, %v3382_v1  ;;  %vm3442_vm13 = vcmp.eq.f32.partialorder %v1469_v10, 8.507059e+37 }
 0x32d   : > { %v3388_v27 = vpop.eup %2725  ;;  %vm1485_vm8 = vcmp.eq.f32.partialorder %v1484_v57, 8.507059e+37  ;;  %v2520_v42 = vmul.f32 -1.442695, %v3423_v45 }
 0x32e   : > { %v3390_v39 = vpop.eup %2727  ;;  %v1296_v43 = vmul.f32 %v3388_v27, %v3380_v63  ;;  %v1449_v21 = vadd.f32 %v2722_v3, %v1448_v40  ;;  %2735 = vrcp.f32 %v3395_v14  ;;  %vm1301_vm15 = vweird.f32 %v3388_v27 }
 0x32f   : > { %v2730_v15 = vpop.eup %2729  ;;  %v1461_v17 = vmul.f32 %v3390_v39, %v3382_v1  ;;  %vm3437_vm2 = vmor %vm1300_vm1, %vm1301_vm15  ;;  %v1319_v49 = vand.u32 2147483647, %v3395_v14 }
 0x330   : > { %v1297_v16 = vsub.f32 1.0, %v1296_v43  ;;  %v2732_v18 = vpop.eup %2731  ;;  %v3403_v19 = vadd.f32 1.0, %v2730_v15  ;;  %v1453_v38 = vsel %vm3414_vm7, %v2722_v3, %v1449_v21  ;;  %vm1480_vm7 = vweird.f32 %v1443_v23 }
 0x331   : > { %v2734_v20 = vpop.eup %2733  ;;  %v3405_v12 = vadd.f32 1.0, %v2732_v18  ;;  %v1462_v36 = vsub.f32 1.0, %v1461_v17  ;;  %v1458_v52 = vsel %vm3399_vm11, %v1457_v29, %v1453_v38  ;;  %v1487_v3 = vor.u32 1.1754944e-38, %v1486_v8 }
 0x332   : > { %v1298_v30 = vmul.f32 %v3388_v27, %v1297_v16  ;;  %v1476_v22 = vmul.f32 %v2734_v20, %v1443_v23  ;;  %2737 = vrcp.f32 %v3403_v19  ;;  %vm1481_vm6 = vweird.f32 %v2734_v20 }
 0x333   : > { %2739 = vrcp.f32 %v3405_v12  ;;  %v1463_v50 = vmul.f32 %v3390_v39, %v1462_v36  ;;  %vm1482_vm12 = vmor %vm1480_vm7, %vm1481_vm6  ;;  %vm1466_vm11 = vweird.f32 %v3390_v39  ;;  %v1505_v7 = vmul.f32 %v1458_v52, %v3360_v47 }
 0x334   : > { %v1477_v54 = vsub.f32 1.0, %v1476_v22  ;;  %v1299_v11 = vadd.f32 %v3388_v27, %v1298_v30  ;;  %v3433_v59 = vpop.eup %2735  ;;  %v1334_v15 = vand.u32 2147483647, %v3403_v19  ;;  %2741 = vpow2.f32 %v2520_v42 }
 0x335   : > { %v1464_v41 = vadd.f32 %v3390_v39, %v1463_v50  ;;  %v1311_v16 = vmul.f32 %v3433_v59, %v3395_v14  ;;  %v1336_v17 = vand.u32 2147483648, %v3403_v19  ;;  %v1499_v29 = vand.u32 2147483647, %v3405_v12 }
 0x336   : > { %v1478_v46 = vmul.f32 %v2734_v20, %v1477_v54  ;;  %v1303_v5 = vsel %vm3437_vm2, %v3388_v27, %v1299_v11  ;;  %v1472_v30 = vor.u32 1.1754944e-38, %v1471_v62  ;;  %vm1330_vm1 = vweird.f32 %v3403_v19 }
 0x337   : > { %v1308_v27 = vsel %vm3427_vm9, %v1307_v48, %v1303_v5  ;;  %vm1335_vm6 = vcmp.eq.f32.partialorder %v1334_v15, 8.507059e+37  ;;  %v1337_v28 = vor.u32 1.1754944e-38, %v1336_v17  ;;  %v1312_v37 = vsub.f32 1.0, %v1311_v16  ;;  %v3513_v17 = vpop.permute.xlu2 %1585 }
 0x338   : > { %v1479_v63 = vadd.f32 %v2734_v20, %v1478_v46  ;;  %v2738_v0 = vpop.eup %2737  ;;  %v1355_v1 = vmul.f32 %v1308_v27, %v3363_v31  ;;  %vm1500_vm7 = vcmp.eq.f32.partialorder %v1499_v29, 8.507059e+37  ;;  %v1509_v46 = vld [vmem:[%s4006_s14] sm:$0xff] }
 0x339   : > { %v2740_v4 = vpop.eup %2739  ;;  %v1326_v23 = vmul.f32 %v2738_v0, %v3403_v19  ;;  %v1313_v2 = vmul.f32 %v3433_v59, %v1312_v37 }
 0x33a   : > { %v1483_v6 = vsel %vm1482_vm12, %v2734_v20, %v1479_v63  ;;  %v1491_v43 = vmul.f32 %v2740_v4, %v3405_v12  ;;  %vm3466_vm12 = vmor %vm1465_vm10, %vm1466_vm11  ;;  %v1501_v20 = vand.u32 2147483648, %v3405_v12  ;;  %vm1496_vm15 = vweird.f32 %v2740_v4  ;;  %v2742_v36 = vpop.eup %2741 }
 0x33b   : > { %v1488_v40 = vsel %vm1485_vm8, %v1487_v3, %v1483_v6  ;;  %v1327_v9 = vsub.f32 1.0, %v1326_v23  ;;  %vm1331_vm8 = vweird.f32 %v2738_v0  ;;  %v1468_v21 = vsel %vm3466_vm12, %v3390_v39, %v1464_v41 }
 0x33c   : > { %v1507_v44 = vmul.f32 %v1488_v40, %v3368_v34  ;;  %v1492_v47 = vsub.f32 1.0, %v1491_v43  ;;  %vm1332_vm9 = vmor %vm1330_vm1, %vm1331_vm8  ;;  %vm1495_vm10 = vweird.f32 %v3405_v12  ;;  %v1473_v39 = vsel %vm3442_vm13, %v1472_v30, %v1468_v21 }
 0x33d   : > { %v1328_v55 = vmul.f32 %v2738_v0, %v1327_v9  ;;  %vm1497_vm2 = vmor %vm1495_vm10, %vm1496_vm15  ;;  %v1502_v54 = vor.u32 1.1754944e-38, %v1501_v20  ;;  %v1294_v38 = vadd.f32 1.0, %v2742_v36  ;;  %v1506_v11 = vmul.f32 %v1473_v39, %v3365_v33  ;;  %v1511_v33 = vld [vmem:[%s4006_s14 + $0x10] sm:$0xff] }
 0x33e   : > { %v1517_v34 = vpack.c.bf16 %v1507_v44, %v1505_v7  ;;  %v1493_v24 = vmul.f32 %v2740_v4, %v1492_v47  ;;  %v1359_v48 = vadd.f32 %v1355_v1, %v3030_v25  ;;  %v1314_v25 = vadd.f32 %v3433_v59, %v1313_v2  ;;  %v1581_v47 = vpop.permute.xlu0 %1580 }
 0x33f   : > { %v1329_v22 = vadd.f32 %v2738_v0, %v1328_v55  ;;  %2743 = vrcp.f32 %v1294_v38  ;;  %vm1316_vm13 = vweird.f32 %v3433_v59  ;;  %vm1519_vm11 = vcmask 261120   ;;  %v1576_v18 = vpop.permute.xlu2 %1575 }
 0x340   : > { %1532 = vmatpush.bf16.msra.mxu0 %v1517_v34  ;;  %2571 = vmatpush.bf16.msra.mxu2 %v1517_v34  ;;  %v1494_v51 = vadd.f32 %v2740_v4, %v1493_v24  ;;  %vm1315_vm12 = vweird.f32 %v3395_v14  ;;  %v1351_v6 = vand.u32 2147483648, %v1294_v38  ;;  %vm1320_vm15 = vcmp.eq.f32.partialorder %v1319_v49, 8.507059e+37  ;;  %v3515_v34 = vpop.permute.xlu1 %1617 }
 0x341   : > { %v1333_v10 = vsel %vm1332_vm9, %v2738_v0, %v1329_v22  ;;  %v1321_v0 = vand.u32 2147483648, %v3395_v14  ;;  %vm1317_vm8 = vmor %vm1315_vm12, %vm1316_vm13  ;;  %v1349_v7 = vand.u32 2147483647, %v1294_v38 }
 0x342   : > { %v1338_v19 = vsel %vm1335_vm6, %v1337_v28, %v1333_v10  ;;  %v1498_v57 = vsel %vm1497_vm2, %v2740_v4, %v1494_v51  ;;  %v1318_v42 = vsel %vm1317_vm8, %v3433_v59, %v1314_v25  ;;  %vm1345_vm6 = vweird.f32 %v1294_v38 }
 0x343   : > { %v1357_v31 = vmul.f32 %v1338_v19, %v3375_v58  ;;  %v1503_v8 = vsel %vm1500_vm7, %v1502_v54, %v1498_v57  ;;  %v1510_v58 = vld [vmem:[%s4006_s14 + $0x8] sm:$0xff]  ;;  %v1322_v5 = vor.u32 1.1754944e-38, %v1321_v0  ;;  %v1352_v14 = vor.u32 1.1754944e-38, %v1351_v6 }
 0x344   : > { %v1508_v12 = vmul.f32 %v1503_v8, %v3378_v61  ;;  %v1512_v61 = vld [vmem:[%s4006_s14 + $0x18] sm:$0xff]  ;;  %v1513_v62 = vpack.c.bf16 %v1510_v58, %v1509_v46  ;;  %vm1350_vm10 = vcmp.eq.f32.partialorder %v1349_v7, 8.507059e+37 }
 0x345   : > { %v1361_v50 = vadd.f32 %v1357_v31, %v3033_v26  ;;  %v1514_v63 = vpack.c.bf16 %v1512_v61, %v1511_v33  ;;  %v2744_v26 = vpop.eup %2743  ;;  %v1323_v41 = vsel %vm1320_vm15, %v1322_v5, %v1318_v42 }
 0x346   : > { %v1518_v52 = vpack.c.bf16 %v1508_v12, %v1506_v11  ;;  %v1341_v3 = vmul.f32 %v2744_v26, %v1294_v38  ;;  %vm1346_vm1 = vweird.f32 %v2744_v26  ;;  %v1356_v43 = vmul.f32 %v1323_v41, %v3373_v53  ;;  %v1613_v20 = vpop.permute.xlu0 %1612 }
 0x347   : > { %v1515_v60 = vpack.c.bf16 %v1361_v50, %v1359_v48  ;;  %vm1347_vm9 = vmor %vm1345_vm6, %vm1346_vm1  ;;  %v1608_v24 = vpop.permute.xlu2 %1607 }
 0x348   : > { %1551 = vmatpush.bf16.msrb.mxu1 %v1518_v52  ;;  %v1342_v4 = vsub.f32 1.0, %v1341_v3  ;;  %v1360_v59 = vadd.f32 %v1356_v43, %v3044_v32  ;;  %v1571_v29 = vpop.permute.xlu1 %1570 }
 0x349   : > { %1533 = vmatpush.bf16.msra.mxu0 %v1515_v60  ;;  %2572 = vmatpush.bf16.msra.mxu2 %v1515_v60 }
 0x34a   : > { %v1343_v23 = vmul.f32 %v2744_v26, %v1342_v4 }
 0x34c   : > { %2527 = vmatmul.msk.bf16.vlgmr.msra.gmra.mxu0 %vm1519_vm11, %v1513_v62  ;;  %2528 = vmatmul.msk.bf16.vlgmr.msra.gmra.mxu2 %vm1519_vm11, %v1514_v63  ;;  %v1344_v40 = vadd.f32 %v2744_v26, %v1343_v23 }
 0x34e   : > { %v1348_v44 = vsel %vm1347_vm9, %v2744_v26, %v1344_v40  ;;  %v1603_v51 = vpop.permute.xlu0 %1602 }
 0x34f   : > { %v1353_v9 = vsel %vm1350_vm10, %v1352_v14, %v1348_v44 }
 0x350   : > { %v1358_v15 = vmul.f32 %v1353_v9, %v3423_v45 }
 0x352   : > { %v1362_v27 = vadd.f32 %v1358_v15, %v3047_v35 }
 0x354   : > { %v1516_v16 = vpack.c.bf16 %v1362_v27, %v1360_v59 }
 0x356   : > { %1552 = vmatpush.bf16.msrb.mxu1 %v1516_v16 }
 0x359   : > { %2529 = vmatmul.msk.bf16.vlgmr.msrb.gmra.mxu1 %vm1519_vm11, %v1513_v62 }
 0x369   : > { %2530 = vmatmul.msk.bf16.gmra.mxu1 %vm1519_vm11, %v1514_v63 }
 0x3c9   : > { %v1535_v53 = vpop.f32.mrf.mxu0 }
 0x3ca   : > { %v1588_v1 = vmul.f32 %v1571_v29, %v1535_v53 }
 0x3cc   : > { %v3523_v39 = vadd.f32 %v1603_v51, %v1588_v1 }
 0x3ce   : > { %v2531_v38 = vmul.f32 -1.442695, %v3523_v39 }
 0x3cf   : > { %v1540_v55 = vpop.f32.mrf.mxu2 }
 0x3d0   : > { %v1592_v21 = vmul.f32 %v1581_v47, %v1540_v55 }
 0x3d1   : > { %v1537_v45 = vpop.f32.mrf.mxu0 }
 0x3d2   : > { %v1590_v32 = vmul.f32 %v1576_v18, %v1537_v45  ;;  %v3519_v30 = vadd.f32 %v1613_v20, %v1592_v21 }
 0x3d4   : > { %v3517_v35 = vadd.f32 %v1608_v24, %v1590_v32  ;;  %v2535_v36 = vmul.f32 -1.442695, %v3519_v30 }
 0x3d6   : > { %v2533_v22 = vmul.f32 -1.442695, %v3517_v35  ;;  %v1554_v37 = vpop.f32.mrf.mxu1 }
 0x3d7   : > { %v1542_v28 = vpop.f32.mrf.mxu2  ;;  %v1589_v54 = vmul.f32 %v1571_v29, %v1554_v37 }
 0x3d8   : > { %2745 = vpow2.f32 %v2533_v22  ;;  %v1594_v10 = vmul.f32 %v3513_v17, %v1542_v28 }
 0x3d9   : > { %2747 = vpow2.f32 %v2535_v36  ;;  %v3526_v57 = vadd.f32 %v1603_v51, %v1589_v54 }
 0x3da   : > { %v3530_v31 = vadd.f32 %v3515_v34, %v1594_v10  ;;  %2749 = vpow2.f32 %v2531_v38 }
 0x3db   : > { %v2532_v8 = vmul.f32 -1.442695, %v3526_v57 }
 0x3dc   : > { %v2537_v12 = vmul.f32 -1.442695, %v3530_v31 }
 0x3dd   : > { %2751 = vpow2.f32 %v2532_v8 }
 0x3de   : > { %v2746_v19 = vpop.eup %2745  ;;  %v1556_v46 = vpop.f32.mrf.mxu1 }
 0x3df   : > { %v3533_v11 = vadd.f32 1.0, %v2746_v19  ;;  %v2748_v2 = vpop.eup %2747  ;;  %v1591_v48 = vmul.f32 %v1576_v18, %v1556_v46 }
 0x3e0   : > { %v3539_v58 = vadd.f32 1.0, %v2748_v2  ;;  %v2750_v61 = vpop.eup %2749 }
 0x3e1   : > { %2753 = vrcp.f32 %v3533_v11  ;;  %v3537_v50 = vadd.f32 %v1608_v24, %v1591_v48  ;;  %v3545_v63 = vadd.f32 1.0, %v2750_v61  ;;  %v1699_v45 = vand.u32 2147483647, %v3533_v11 }
 0x3e2   : > { %2755 = vpow2.f32 %v2537_v12  ;;  %v1701_v21 = vand.u32 2147483648, %v3533_v11  ;;  %vm1725_vm7 = vweird.f32 %v3539_v58  ;;  %vm1695_vm13 = vweird.f32 %v3533_v11 }
 0x3e3   : > { %v2534_v33 = vmul.f32 -1.442695, %v3537_v50  ;;  %v2752_v52 = vpop.eup %2751  ;;  %v1671_v53 = vand.u32 2147483648, %v3545_v63  ;;  %v1729_v51 = vand.u32 2147483647, %v3539_v58  ;;  %v1731_v36 = vand.u32 2147483648, %v3539_v58 }
 0x3e4   : > { %v3547_v0 = vadd.f32 1.0, %v2752_v52  ;;  %vm1700_vm15 = vcmp.eq.f32.partialorder %v1699_v45, 8.507059e+37  ;;  %v1702_v38 = vor.u32 1.1754944e-38, %v1701_v21  ;;  %vm1665_vm10 = vweird.f32 %v3545_v63 }
 0x3e5   : > { %2757 = vpow2.f32 %v2534_v33 }
 0x3e6   : > { %2759 = vrcp.f32 %v3539_v58  ;;  %v1559_v62 = vpop.f32.mrf.mxu1 }
 0x3e7   : > { %v3542_v60 = vpop.eup %2753  ;;  %v1593_v25 = vmul.f32 %v1581_v47, %v1559_v62  ;;  %2761 = vrcp.f32 %v3545_v63 }
 0x3e8   : > { %v2756_v26 = vpop.eup %2755  ;;  %v1691_v3 = vmul.f32 %v3542_v60, %v3533_v11  ;;  %2763 = vrcp.f32 %v3547_v0  ;;  %vm1696_vm2 = vweird.f32 %v3542_v60 }
 0x3e9   : > { %v3549_v49 = vadd.f32 %v1613_v20, %v1593_v25  ;;  %v3554_v4 = vadd.f32 1.0, %v2756_v26  ;;  %vm3591_vm12 = vmor %vm1695_vm13, %vm1696_vm2 }
 0x3ea   : > { %v1692_v7 = vsub.f32 1.0, %v1691_v3 }
 0x3eb   : > { %v2758_v42 = vpop.eup %2757  ;;  %v2536_v5 = vmul.f32 -1.442695, %v3549_v49 }
 0x3ec   : > { %v3557_v6 = vpop.eup %2759  ;;  %v1655_v23 = vadd.f32 1.0, %v2758_v42  ;;  %v1693_v9 = vmul.f32 %v3542_v60, %v1692_v7 }
 0x3ed   : > { %2765 = vpow2.f32 %v2536_v5  ;;  %v1721_v14 = vmul.f32 %v3557_v6, %v3539_v58  ;;  %v3564_v43 = vpop.eup %2761  ;;  %vm1726_vm1 = vweird.f32 %v3557_v6 }
 0x3ee   : > { %2767 = vrcp.f32 %v1655_v23  ;;  %v1561_v41 = vpop.f32.mrf.mxu1  ;;  %v3570_v15 = vpop.eup %2763  ;;  %v1661_v32 = vmul.f32 %v3564_v43, %v3545_v63  ;;  %v1716_v28 = vand.u32 2147483648, %v1655_v23  ;;  %v1714_v19 = vand.u32 2147483647, %v1655_v23 }
 0x3ef   : > { %2769 = vrcp.f32 %v3554_v4  ;;  %v1595_v40 = vmul.f32 %v3513_v17, %v1561_v41  ;;  %v1722_v16 = vsub.f32 1.0, %v1721_v14  ;;  %v1669_v17 = vand.u32 2147483647, %v3545_v63 }
 0x3f0   : > { %v1676_v22 = vmul.f32 %v3570_v15, %v3547_v0  ;;  %v1662_v8 = vsub.f32 1.0, %v1661_v32  ;;  %vm1710_vm6 = vweird.f32 %v1655_v23  ;;  %v1717_v52 = vor.u32 1.1754944e-38, %v1716_v28 }
 0x3f1   : > { %v3567_v44 = vadd.f32 %v3515_v34, %v1595_v40  ;;  %v1694_v34 = vadd.f32 %v3542_v60, %v1693_v9  ;;  %v1723_v29 = vmul.f32 %v3557_v6, %v1722_v16  ;;  %vm1715_vm2 = vcmp.eq.f32.partialorder %v1714_v19, 8.507059e+37 }
 0x3f2   : > { %v1677_v2 = vsub.f32 1.0, %v1676_v22  ;;  %vm1666_vm13 = vweird.f32 %v3564_v43  ;;  %v1663_v42 = vmul.f32 %v3564_v43, %v1662_v8  ;;  %v1759_v28 = vand.u32 2147483647, %v3554_v4 }
 0x3f3   : > { %v2766_v59 = vpop.eup %2765  ;;  %v2538_v27 = vmul.f32 -1.442695, %v3567_v44  ;;  %v1698_v10 = vsel %vm3591_vm12, %v3542_v60, %v1694_v34  ;;  %v1724_v46 = vadd.f32 %v3557_v6, %v1723_v29  ;;  %vm3610_vm12 = vcmp.eq.f32.partialorder %v1729_v51, 8.507059e+37  ;;  %vm3654_vm14 = vmor %vm1665_vm10, %vm1666_vm13 }
 0x3f4   : > { %v2768_v47 = vpop.eup %2767  ;;  %v3573_v18 = vadd.f32 1.0, %v2766_v59  ;;  %v1703_v61 = vsel %vm1700_vm15, %v1702_v38, %v1698_v10  ;;  %v1678_v40 = vmul.f32 %v3570_v15, %v1677_v2  ;;  %vm1755_vm15 = vweird.f32 %v3554_v4 }
 0x3f5   : > { %v3577_v55 = vpop.eup %2769  ;;  %2771 = vpow2.f32 %v2538_v27  ;;  %v1706_v20 = vmul.f32 %v2768_v47, %v1655_v23  ;;  %vm1711_vm8 = vweird.f32 %v2768_v47  ;;  %v3616_v5 = vmul.f32 %v1703_v61, %v3517_v35 }
 0x3f6   : > { %2773 = vrcp.f32 %v3573_v18  ;;  %v1751_v37 = vmul.f32 %v3577_v55, %v3554_v4  ;;  %vm1712_vm9 = vmor %vm1710_vm6, %vm1711_vm8  ;;  %v1732_v35 = vor.u32 1.1754944e-38, %v1731_v36  ;;  %v1746_v9 = vand.u32 2147483648, %v3573_v18 }
 0x3f7   : > { %v1707_v24 = vsub.f32 1.0, %v1706_v20  ;;  %vm3625_vm8 = vmor %vm1725_vm7, %vm1726_vm1  ;;  %v1744_v27 = vand.u32 2147483647, %v3573_v18  ;;  %v1664_v16 = vadd.f32 %v3564_v43, %v1663_v42  ;;  %vm1740_vm1 = vweird.f32 %v3573_v18 }
 0x3f8   : > { %v1752_v60 = vsub.f32 1.0, %v1751_v37  ;;  %v1728_v14 = vsel %vm3625_vm8, %v3557_v6, %v1724_v46  ;;  %v1686_v6 = vand.u32 2147483648, %v3547_v0  ;;  %v1679_v20 = vadd.f32 %v3570_v15, %v1678_v40 }
 0x3f9   : > { %v1708_v54 = vmul.f32 %v2768_v47, %v1707_v24  ;;  %vm1681_vm6 = vweird.f32 %v3570_v15  ;;  %v1733_v21 = vsel %vm3610_vm12, %v1732_v35, %v1728_v14  ;;  %v1747_v32 = vor.u32 1.1754944e-38, %v1746_v9  ;;  %v1829_v35 = vld [vmem:[%s4010_s18] sm:$0xff]  ;;  %v1830_v9 = vld [vmem:[%s4010_s18 + $0x8] sm:$0xff] }
 0x3fa   : > { %vm1745_vm8 = vcmp.eq.f32.partialorder %v1744_v27, 8.507059e+37  ;;  %vm1680_vm12 = vweird.f32 %v3547_v0  ;;  %v1761_v51 = vand.u32 2147483648, %v3554_v4  ;;  %v1668_v36 = vsel %vm3654_vm14, %v3564_v43, %v1664_v16 }
 0x3fb   : > { %v2772_v11 = vpop.eup %2771  ;;  %v1709_v12 = vadd.f32 %v2768_v47, %v1708_v54  ;;  %v3671_v10 = vmul.f32 %v1733_v21, %v3519_v30  ;;  %v1672_v46 = vor.u32 1.1754944e-38, %v1671_v53 }
 0x3fc   : > { %v2774_v48 = vpop.eup %2773  ;;  %v3604_v33 = vadd.f32 1.0, %v2772_v11 }
 0x3fd   : > { %v1713_v62 = vsel %vm1712_vm9, %v2768_v47, %v1709_v12  ;;  %v1736_v25 = vmul.f32 %v2774_v48, %v3573_v18  ;;  %vm1741_vm7 = vweird.f32 %v2774_v48  ;;  %v1684_v47 = vand.u32 2147483647, %v3547_v0 }
 0x3fe   : > { %2775 = vrcp.f32 %v3604_v33  ;;  %v1718_v26 = vsel %vm1715_vm2, %v1717_v52, %v1713_v62  ;;  %vm1742_vm9 = vmor %vm1740_vm1, %vm1741_vm7  ;;  %vm1756_vm2 = vweird.f32 %v3577_v55  ;;  %v1776_v30 = vand.u32 2147483648, %v3604_v33 }
 0x3ff   : > { %v3619_v23 = vmul.f32 %v1718_v26, %v3537_v50  ;;  %v1737_v41 = vsub.f32 1.0, %v1736_v25  ;;  %v1753_v50 = vmul.f32 %v3577_v55, %v1752_v60  ;;  %vm3666_vm7 = vmor %vm1680_vm12, %vm1681_vm6  ;;  %vm1685_vm14 = vcmp.eq.f32.partialorder %v1684_v47, 8.507059e+37 }
 0x400   : > { %vm3678_vm10 = vmor %vm1755_vm15, %vm1756_vm2  ;;  %v1683_v43 = vsel %vm3666_vm7, %v3570_v15, %v1679_v20  ;;  %v1774_v11 = vand.u32 2147483647, %v3604_v33  ;;  %v1762_v12 = vor.u32 1.1754944e-38, %v1761_v51  ;;  %vm1760_vm15 = vcmp.eq.f32.partialorder %v1759_v28, 8.507059e+37 }
 0x401   : > { %v1791_v59 = vadd.f32 %v3619_v23, %v3616_v5  ;;  %v1738_v58 = vmul.f32 %v2774_v48, %v1737_v41  ;;  %v1754_v24 = vadd.f32 %v3577_v55, %v1753_v50  ;;  %vm1770_vm1 = vweird.f32 %v3604_v33  ;;  %v1831_v50 = vld [vmem:[%s4010_s18 + $0x10] sm:$0xff] }
 0x402   : > { %vm1670_vm6 = vcmp.eq.f32.partialorder %v1669_v17, 8.507059e+37  ;;  %vm1775_vm2 = vcmp.eq.f32.partialorder %v1774_v11, 8.507059e+37  ;;  %vm1833_vm12 = vcmask 15360  }
 0x403   : > { %1792 = vadd.xlane.f32.xlu0 %v1791_v59  ;;  %v1739_v34 = vadd.f32 %v2774_v48, %v1738_v58  ;;  %v1758_v38 = vsel %vm3678_vm10, %v3577_v55, %v1754_v24  ;;  %v1673_v61 = vsel %vm1670_vm6, %v1672_v46, %v1668_v36  ;;  %v1832_v59 = vld [vmem:[%s4010_s18 + $0x18] sm:$0xff] }
 0x404   : > { %v2776_v45 = vpop.eup %2775  ;;  %v1763_v55 = vsel %vm1760_vm15, %v1762_v12, %v1758_v38 }
 0x405   : > { %v1743_v29 = vsel %vm1742_vm9, %v2774_v48, %v1739_v34  ;;  %v1766_v22 = vmul.f32 %v2776_v45, %v3604_v33  ;;  %vm1771_vm13 = vweird.f32 %v2776_v45  ;;  %v1777_v48 = vor.u32 1.1754944e-38, %v1776_v30 }
 0x406   : > { %v1748_v1 = vsel %vm1745_vm8, %v1747_v32, %v1743_v29  ;;  %vm1772_vm9 = vmor %vm1770_vm1, %vm1771_vm13  ;;  %v3701_v53 = vmul.f32 %v1763_v55, %v3530_v31  ;;  %v3707_v33 = vmul.f32 %v1673_v61, %v3523_v39  ;;  %v1804_v39 = vld [vmem:[%s4009_s17] sm:$0x3]  ;;  %vm1846_vm8 = vcmask 1041408  }
 0x407   : > { %v3674_v0 = vmul.f32 %v1748_v1, %v3549_v49  ;;  %v1767_v19 = vsub.f32 1.0, %v1766_v22  ;;  %v1687_v49 = vor.u32 1.1754944e-38, %v1686_v6 }
 0x409   : > { %v1794_v4 = vadd.f32 %v3674_v0, %v3671_v10  ;;  %v1768_v8 = vmul.f32 %v2776_v45, %v1767_v19  ;;  %v1688_v15 = vsel %vm1685_vm14, %v1687_v49, %v1683_v43 }
 0x40a   : > { %v3698_v60 = vmul.f32 %v1688_v15, %v3526_v57 }
 0x40b   : > { %1795 = vadd.xlane.f32.xlu2 %v1794_v4  ;;  %v1769_v2 = vadd.f32 %v2776_v45, %v1768_v8 }
 0x40c   : > { %v1788_v17 = vadd.f32 %v3698_v60, %v3707_v33 }
 0x40d   : > { %v1773_v52 = vsel %vm1772_vm9, %v2776_v45, %v1769_v2 }
 0x40e   : > { %v1778_v62 = vsel %vm1775_vm2, %v1777_v48, %v1773_v52 }
 0x40f   : > { %v3704_v25 = vmul.f32 %v1778_v62, %v3567_v44 }
 0x411   : > { %v1797_v63 = vadd.f32 %v3704_v25, %v3701_v53 }
 0x413   : > { %1798 = vadd.xlane.f32.xlu1 %v1797_v63  ;;  %1789 = vadd.xlane.f32.xlu2 %v1788_v17 }
 0x476   : > { %v1793_v42 = vpop.xlane.xlu0 %1792 }
 0x477   : > { %v1801_v44 = vmul.f32 0.00390625, %v1793_v42 }
 0x47e   : > { %v1796_v57 = vpop.xlane.xlu2 %1795 }
 0x47f   : > { %v1802_v31 = vmul.f32 0.00390625, %v1796_v57 }
 0x486   : > { %v1799_v26 = vpop.xlane.xlu1 %1798  ;;  %v1790_v7 = vpop.xlane.xlu2 %1789 }
 0x487   : > { %v1803_v3 = vmul.f32 0.00390625, %v1799_v26  ;;  %v1800_v41 = vmul.f32 0.00390625, %v1790_v7 }
 0x489   : > { %1820 = vmatpush.msrb.mxu2 %v1803_v3 }
 0x48b   : > { %1821 = vmatpush.msrb.mxu2 %v1802_v31 }
 0x48d   : > { %1822 = vmatpush.msrb.mxu2 %v1801_v44 }
 0x48f   : > { %1823 = vmatpush.msrb.mxu2 %v1800_v41 }
 0x490   : > { %2539 = vmatmul.msk.f32.vlgmr.msrb.gmra.mxu2 %vm1519_vm11, %v1804_v39 }
 0x513   : > { %v1825_v40 = vpop.f32.mrf.mxu2 }
 0x514   : > { %v1828_v14 = vmax.f32 %v1825_v40, 0.0 }
 0x516   : > { %2540 = vmatpush.msk.msrb.mxu3 %vm1846_vm8, %v1828_v14 }
 0x517   : > { %2541 = vmatmul.msk.f32.vlgmr.msrb.gmra.mxu3 %vm1833_vm12, %v1829_v35 }
 0x51f   : > { %2542 = vmatmul.msk.f32.gmra.mxu3 %vm1833_vm12, %v1830_v9 }
 0x527   : > { %2543 = vmatmul.msk.f32.gmra.mxu3 %vm1833_vm12, %v1831_v50 }
 0x52f   : > { %2544 = vmatmul.msk.f32.gmra.mxu3 %vm1833_vm12, %v1832_v59 }
 0x59a   : > { %v1867_v58 = vpop.f32.mrf.mxu3 }
 0x59b   : > { %v2545_v27 = vmul.f32 -1.442695, %v1867_v58 }
 0x59d   : > { %2777 = vpow2.f32 %v2545_v27 }
 0x5a2   : > { %v1870_v16 = vpop.f32.mrf.mxu3 }
 0x5a3   : > { %v2778_v47 = vpop.eup %2777  ;;  %v2546_v6 = vmul.f32 -1.442695, %v1870_v16  ;;  %v2832_v16 = vmov 32.0  }
 0x5a4   : > { %v1891_v34 = vadd.f32 1.0, %v2778_v47 }
 0x5a5   : > { %2779 = vpow2.f32 %v2546_v6 }
 0x5a6   : > { %2781 = vrcp.f32 %v1891_v34  ;;  %v1906_v18 = vand.u32 2147483648, %v1891_v34  ;;  %v1904_v28 = vand.u32 2147483647, %v1891_v34  ;;  %vm1900_vm7 = vweird.f32 %v1891_v34 }
 0x5a8   : > { %v1907_v38 = vor.u32 1.1754944e-38, %v1906_v18  ;;  %vm1905_vm14 = vcmp.eq.f32.partialorder %v1904_v28, 8.507059e+37 }
 0x5aa   : > { %v1873_v20 = vpop.f32.mrf.mxu3 }
 0x5ab   : > { %v2780_v45 = vpop.eup %2779  ;;  %v2547_v21 = vmul.f32 -1.442695, %v1873_v20 }
 0x5ac   : > { %v2782_v32 = vpop.eup %2781  ;;  %v1892_v24 = vadd.f32 1.0, %v2780_v45 }
 0x5ad   : > { %2783 = vpow2.f32 %v2547_v21  ;;  %v1896_v29 = vmul.f32 %v2782_v32, %v1891_v34  ;;  %vm1901_vm11 = vweird.f32 %v2782_v32 }
 0x5ae   : > { %2785 = vrcp.f32 %v1892_v24  ;;  %vm1902_vm10 = vmor %vm1900_vm7, %vm1901_vm11  ;;  %v1921_v11 = vand.u32 2147483648, %v1892_v24  ;;  %v1919_v46 = vand.u32 2147483647, %v1892_v24  ;;  %vm1915_vm15 = vweird.f32 %v1892_v24 }
 0x5af   : > { %v1897_v22 = vsub.f32 1.0, %v1896_v29 }
 0x5b0   : > { %v1922_v61 = vor.u32 1.1754944e-38, %v1921_v11  ;;  %vm1920_vm6 = vcmp.eq.f32.partialorder %v1919_v46, 8.507059e+37 }
 0x5b1   : > { %v1898_v1 = vmul.f32 %v2782_v32, %v1897_v22 }
 0x5b2   : > { %v1876_v51 = vpop.f32.mrf.mxu3 }
 0x5b3   : > { %v2784_v36 = vpop.eup %2783  ;;  %v2548_v37 = vmul.f32 -1.442695, %v1876_v51  ;;  %v1899_v54 = vadd.f32 %v2782_v32, %v1898_v1 }
 0x5b4   : > { %v2786_v19 = vpop.eup %2785  ;;  %v1893_v43 = vadd.f32 1.0, %v2784_v36 }
 0x5b5   : > { %2787 = vpow2.f32 %v2548_v37  ;;  %v1903_v30 = vsel %vm1902_vm10, %v2782_v32, %v1899_v54  ;;  %v1911_v49 = vmul.f32 %v2786_v19, %v1892_v24  ;;  %vm1916_vm13 = vweird.f32 %v2786_v19 }
 0x5b6   : > { %2789 = vrcp.f32 %v1893_v43  ;;  %v1908_v4 = vsel %vm1905_vm14, %v1907_v38, %v1903_v30  ;;  %vm1917_vm1 = vmor %vm1915_vm15, %vm1916_vm13  ;;  %v1936_v57 = vand.u32 2147483648, %v1893_v43  ;;  %v1934_v3 = vand.u32 2147483647, %v1893_v43 }
 0x5b7   : > { %1957 = vperm.xlu1 %2599, %v1908_v4   ;;  %v1912_v8 = vsub.f32 1.0, %v1911_v49  ;;  %vm1930_vm2 = vweird.f32 %v1893_v43  ;;  %vm2040_vm15 = vcmask 1040384  }
 0x5b8   : > { %v1937_v7 = vor.u32 1.1754944e-38, %v1936_v57  ;;  %vm1935_vm12 = vcmp.eq.f32.partialorder %v1934_v3, 8.507059e+37 }
 0x5b9   : > { %v1913_v12 = vmul.f32 %v2786_v19, %v1912_v8 }
 0x5bb   : > { %v2788_v15 = vpop.eup %2787  ;;  %v1914_v2 = vadd.f32 %v2786_v19, %v1913_v12 }
 0x5bc   : > { %v2790_v55 = vpop.eup %2789  ;;  %v1894_v48 = vadd.f32 1.0, %v2788_v15 }
 0x5bd   : > { %v1918_v52 = vsel %vm1917_vm1, %v2786_v19, %v1914_v2  ;;  %v1926_v62 = vmul.f32 %v2790_v55, %v1893_v43  ;;  %vm1931_vm9 = vweird.f32 %v2790_v55 }
 0x5be   : > { %2791 = vrcp.f32 %v1894_v48  ;;  %v1923_v63 = vsel %vm1920_vm6, %v1922_v61, %v1918_v52  ;;  %vm1932_vm8 = vmor %vm1930_vm2, %vm1931_vm9  ;;  %v1951_v14 = vand.u32 2147483648, %v1894_v48  ;;  %v1949_v9 = vand.u32 2147483647, %v1894_v48 }
 0x5bf   : > { %1962 = vperm.xlu2 %2600, %v1923_v63   ;;  %v1927_v17 = vsub.f32 1.0, %v1926_v62  ;;  %vm1945_vm7 = vweird.f32 %v1894_v48  ;;  %2793 = vrcp.f32 %v2832_v16  ;;  %vm4094_vm6 = vcmp.ge.f32.partialorder %v3240_v13, 1.0 }
 0x5c0   : > { %v1952_v59 = vor.u32 1.1754944e-38, %v1951_v14  ;;  %vm1950_vm14 = vcmp.eq.f32.partialorder %v1949_v9, 8.507059e+37 }
 0x5c1   : > { %v1928_v26 = vmul.f32 %v2790_v55, %v1927_v17 }
 0x5c3   : > { %v1929_v42 = vadd.f32 %v2790_v55, %v1928_v26 }
 0x5c4   : > { %v2792_v31 = vpop.eup %2791 }
 0x5c5   : > { %v1933_v44 = vsel %vm1932_vm8, %v2790_v55, %v1929_v42  ;;  %v1941_v41 = vmul.f32 %v2792_v31, %v1894_v48  ;;  %vm1946_vm11 = vweird.f32 %v2792_v31  ;;  %v2794_v20 = vpop.eup %2793 }
 0x5c6   : > { %v1938_v39 = vsel %vm1935_vm12, %v1937_v7, %v1933_v44  ;;  %vm1947_vm10 = vmor %vm1945_vm7, %vm1946_vm11  ;;  %v2002_v18 = vmul.f32 32.0, %v2794_v20  ;;  %vm2006_vm13 = vweird.f32 %v2794_v20  ;;  %v2285_v44 = vstv %s2556_s2  ;;  %s3874_s2 = sld [smem:[#allocation2 + $0x9]] }
 0x5c7   : > { %1967 = vperm.xlu0 %2598, %v1938_v39   ;;  %v1942_v40 = vsub.f32 1.0, %v1941_v41  ;;  %vm4098_vm12 = vmmov %vm4094_vm6  ;;  %vm4100_vm7 = vcmp.le.f32.partialorder %v3240_v13, 14.0 }
 0x5c8   : > { %v2003_v36 = vsub.f32 1.0, %v2002_v18 }
 0x5c9   : > { %v1943_v35 = vmul.f32 %v2792_v31, %v1942_v40 }
 0x5ca   : > { %v2004_v49 = vmul.f32 %v2794_v20, %v2003_v36 }
 0x5cb   : > { %v1944_v50 = vadd.f32 %v2792_v31, %v1943_v35 }
 0x5cc   : > { %v2005_v48 = vadd.f32 %v2794_v20, %v2004_v49 }
 0x5cd   : > { %v1948_v58 = vsel %vm1947_vm10, %v2792_v31, %v1944_v50 }
 0x5ce   : > { %v1953_v27 = vsel %vm1950_vm14, %v1952_v59, %v1948_v58  ;;  %v2007_v3 = vsel %vm2006_vm13, %v2794_v20, %v2005_v48 }
 0x5cf   : > { %1972 = vperm.xlu1 %2599, %v1953_v27  }
 0x619   : > { %v1963_v6 = vpop.permute.xlu2 %1962 }
 0x61a   : > { %v3736_v32 = vmul.f32 %v1963_v6, %v3616_v5  ;;  %v3739_v24 = vmul.f32 %v1963_v6, %v3619_v23 }
 0x629   : > { %v1958_v47 = vpop.permute.xlu1 %1957 }
 0x62a   : > { %v3730_v45 = vmul.f32 %v1958_v47, %v3707_v33  ;;  %v3733_v21 = vmul.f32 %v1958_v47, %v3698_v60 }
 0x62c   : > { %v1983_v33 = vadd.f32 %v3736_v32, %v3730_v45  ;;  %v1992_v60 = vadd.f32 %v3739_v24, %v3733_v21 }
 0x639   : > { %v1968_v34 = vpop.permute.xlu0 %1967 }
 0x63a   : > { %v3742_v29 = vmul.f32 %v1968_v34, %v3671_v10  ;;  %v3745_v22 = vmul.f32 %v1968_v34, %v3674_v0 }
 0x63c   : > { %v1984_v5 = vadd.f32 %v1983_v33, %v3742_v29  ;;  %v1993_v28 = vadd.f32 %v1992_v60, %v3745_v22  ;;  %v2010_v0 = vmax.f32 %v3730_v45, %v3742_v29  ;;  %v2019_v51 = vmax.f32 %v3733_v21, %v3745_v22 }
 0x641   : > { %v1973_v1 = vpop.permute.xlu1 %1972 }
 0x642   : > { %v3754_v23 = vmul.f32 %v1973_v1, %v3701_v53  ;;  %v3757_v10 = vmul.f32 %v1973_v1, %v3704_v25 }
 0x644   : > { %v1985_v37 = vadd.f32 %v1984_v5, %v3754_v23  ;;  %v1994_v54 = vadd.f32 %v1993_v28, %v3757_v10  ;;  %v2011_v19 = vmax.f32 %v3736_v32, %v3754_v23  ;;  %v2020_v53 = vmax.f32 %v3739_v24, %v3757_v10 }
 0x646   : > { %v1986_v43 = vrot.slane %v1985_v37, 4  ;;  %v1995_v25 = vrot.slane %v1994_v54, 4  ;;  %v2012_v38 = vmax.f32 %v2010_v0, %v2011_v19  ;;  %v2021_v30 = vmax.f32 %v2019_v51, %v2020_v53 }
 0x648   : > { %v1987_v4 = vadd.f32 %v1986_v43, %v1985_v37  ;;  %v1996_v8 = vadd.f32 %v1995_v25, %v1994_v54  ;;  %v2013_v11 = vrot.slane %v2012_v38, 4  ;;  %v2022_v12 = vrot.slane %v2021_v30, 4 }
 0x64a   : > { %v1988_v46 = vrot.slane %v1987_v4, 2  ;;  %v1997_v15 = vrot.slane %v1996_v8, 2  ;;  %v2014_v2 = vmax.f32 %v2012_v38, %v2013_v11  ;;  %v2023_v55 = vmax.f32 %v2021_v30, %v2022_v12 }
 0x64c   : > { %v1989_v61 = vadd.f32 %v1988_v46, %v1987_v4  ;;  %v1998_v52 = vadd.f32 %v1997_v15, %v1996_v8  ;;  %v2024_v62 = vrot.slane %v2023_v55, 2  ;;  %v2015_v57 = vrot.slane %v2014_v2, 2 }
 0x64e   : > { %v1990_v63 = vrot.slane %v1989_v61, 1  ;;  %v1999_v17 = vrot.slane %v1998_v52, 1  ;;  %v2025_v26 = vmax.f32 %v2023_v55, %v2024_v62  ;;  %v2016_v41 = vmax.f32 %v2014_v2, %v2015_v57 }
 0x650   : > { %v1991_v42 = vadd.f32 %v1990_v63, %v1989_v61  ;;  %v2000_v31 = vadd.f32 %v1999_v17, %v1998_v52  ;;  %v2026_v7 = vrot.slane %v2025_v26, 1  ;;  %v2017_v9 = vrot.slane %v2016_v41, 1 }
 0x652   : > { %v3769_v39 = vmax.f32 %v2025_v26, %v2026_v7  ;;  %v2009_v40 = vmul.f32 %v2007_v3, %v2000_v31  ;;  %v2008_v14 = vmul.f32 %v2007_v3, %v1991_v42  ;;  %v3778_v27 = vmax.f32 %v2016_v41, %v2017_v9 }
 0x654   : > { %2142 = vrot.lane.b32.xlu1 %v3769_v39, %s4085_s25  ;;  %2029 = vrot.lane.b32.xlu0 %v2009_v40, %s4085_s25  ;;  %v2287_v35 = vmul.f32 %v2285_v44, %v2009_v40  ;;  %v2286_v59 = vmul.f32 %v2285_v44, %v2008_v14 }
 0x655   : > { %2033 = vrot.lane.b32.xlu2 %v2008_v14, %s4085_s25 }
 0x656   : > { %v2290_v50 = vrot.slane %v2287_v35, 7 }
 0x658   : > { %v3776_v58 = vsel %vm2040_vm15, %v2286_v59, %v2290_v50 }
 0x65c   : > { %2101 = vrot.lane.b32.xlu1 %v2009_v40, %s4086_s21  ;;  %2146 = vrot.lane.b32.xlu0 %v3778_v27, %s4085_s25  ;;  %s3881_s25 = sld [smem:[#allocation2 + $0x5]] }
 0x65d   : > { %2099 = vrot.lane.b32.xlu2 %v2008_v14, %s4086_s21 }
 0x664   : > { %2211 = vrot.lane.b32.xlu0 %v3778_v27, %s4086_s21  ;;  %2076 = vrot.lane.b32.xlu1 %v2008_v14, %s4087_s23 }
 0x665   : > { %2213 = vrot.lane.b32.xlu2 %v3769_v39, %s4086_s21  ;;  %s3883_s21 = sld [smem:[#allocation2 + $0x6]] }
 0x66c   : > { %2185 = vrot.lane.b32.xlu0 %v3769_v39, %s4087_s23  ;;  %2086 = vrot.lane.b32.xlu1 %v2008_v14, %s4088_s24 }
 0x66d   : > { %2073 = vrot.lane.b32.xlu2 %v2009_v40, %s4087_s23 }
 0x674   : > { %2088 = vrot.lane.b32.xlu0 %v2009_v40, %s4088_s24 }
 0x675   : > { %2188 = vrot.lane.b32.xlu2 %v3778_v27, %s4087_s23 }
 0x6af   : > { %v2034_v16 = vpop.permute.xlu2 %2033 }
 0x6b7   : > { %v2100_v19 = vpop.permute.xlu2 %2099 }
 0x6bf   : > { %v2214_v8 = vpop.permute.xlu2 %2213 }
 0x6c6   : > { %v2030_v47 = vpop.permute.xlu0 %2029  ;;  %v2143_v18 = vpop.permute.xlu1 %2142 }
 0x6c7   : > { %v2035_v6 = vsel %vm661_vm0, %v2034_v16, %v2030_v47  ;;  %v2037_v20 = vsel %vm661_vm0, %v2030_v47, %v2034_v16  ;;  %v2074_v56 = vpop.permute.xlu2 %2073 }
 0x6c8   : > { %v2039_v34 = vrot.slane %v2035_v6, 7 }
 0x6ca   : > { %v2041_v33 = vsel %vm2040_vm15, %v2037_v20, %v2039_v34 }
 0x6cb   : > { %v3801_v60 = vsel %vm650_vm5, %v2041_v33, 0.0  ;;  %v2254_v33 = vstv %s3857_s4  ;;  %s3923_s4 = sld [smem:[#allocation2 + $0xb]] }
 0x6cc   : > { %v2049_v1 = vperm.slane %v3801_v60, 0  ;;  %v2045_v5 = vperm.slane %v3801_v60, 1 }
 0x6ce   : > { %v2147_v28 = vpop.permute.xlu0 %2146  ;;  %2050 = vrot.lane.b32.xlu0 %v2049_v1, %s4087_s23  ;;  %2046 = vrot.lane.b32.xlu1 %v2045_v5, %s4087_s23  ;;  %v2102_v53 = vpop.permute.xlu1 %2101 }
 0x6cf   : > { %v2148_v0 = vsel %vm661_vm0, %v2147_v28, %v2143_v18  ;;  %v2150_v36 = vsel %vm661_vm0, %v2143_v18, %v2147_v28  ;;  %v2106_v38 = vsel %vm1096_vm4, %v2102_v53, %v2100_v19  ;;  %v2103_v4 = vsel %vm1096_vm4, %v2100_v19, %v2102_v53  ;;  %v2189_v17 = vpop.permute.xlu2 %2188 }
 0x6d0   : > { %v2152_v51 = vrot.slane %v2148_v0, 7  ;;  %v2108_v30 = vrot.slane %v2106_v38, 7  ;;  %vm4089_vm0 = vcmask 7168  }
 0x6d1   : > { %vm4093_vm1 = vmmov %vm4089_vm0 }
 0x6d2   : > { %v2153_v37 = vsel %vm2040_vm15, %v2150_v36, %v2152_v51  ;;  %v2109_v11 = vsel %vm2040_vm15, %v2103_v4, %v2108_v30  ;;  %vm4095_vm9 = vmmov %vm4089_vm0  ;;  %v2261_v36 = vstv %s3861_s0  ;;  %s3936_s0 = sld [smem:[#allocation2 + $0xd]] }
 0x6d3   : > { %v3812_v54 = vsel %vm650_vm5, %v2153_v37, 0.0  ;;  %v3828_v46 = vsel %vm651_vm3, %v2109_v11, 0.0  ;;  %vm4092_vm5 = vmmov %vm4089_vm0  ;;  %v2265_v37 = vstv %s3863_s28  ;;  %s3939_s28 = sld [smem:[#allocation2 + $0xe]] }
 0x6d4   : > { %v2157_v43 = vperm.slane %v3812_v54, 1  ;;  %v2161_v25 = vperm.slane %v3812_v54, 0  ;;  %v2113_v2 = vperm.slane %v3828_v46, 1  ;;  %v2117_v52 = vperm.slane %v3828_v46, 0  ;;  %vm4096_vm2 = vmmov %vm4089_vm0 }
 0x6d5   : > { %v2266_v11 = vmul.f32 %v2265_v37, %v3812_v54  ;;  %vm4099_vm11 = vmmov %vm4089_vm0 }
 0x6d6   : > { %2158 = vrot.lane.b32.xlu2 %v2157_v43, %s4087_s23  ;;  %2060 = vrot.lane.b32.xlu0 %v2049_v1, %s4088_s24  ;;  %v2212_v49 = vpop.permute.xlu0 %2211  ;;  %v2077_v57 = vpop.permute.xlu1 %2076  ;;  %vm4102_vm14 = vmmov %vm4089_vm0 }
 0x6d7   : > { %2162 = vrot.lane.b32.xlu1 %v2161_v25, %s4087_s23  ;;  %v2218_v12 = vsel %vm1096_vm4, %v2214_v8, %v2212_v49  ;;  %v2215_v55 = vsel %vm1096_vm4, %v2212_v49, %v2214_v8  ;;  %vm4091_vm4 = vcmask 1039360   ;;  %v2078_v34 = vsel %vm4093_vm1, %v2077_v57, %v2074_v56 }
 0x6d8   : > { %v2220_v15 = vrot.slane %v2218_v12, 7  ;;  %vm4097_vm8 = vmmov %vm4091_vm4  ;;  %v2262_v8 = vmul.f32 %v2261_v36, %v3801_v60 }
 0x6d9   : > { %vm4101_vm10 = vmmov %vm4091_vm4 }
 0x6da   : > { %v2221_v48 = vsel %vm2040_vm15, %v2215_v55, %v2220_v15  ;;  %v2269_v55 = vstv %s3870_s19  ;;  %vm4103_vm13 = vmmov %vm4091_vm4  ;;  %s3948_s19 = sld [smem:[#allocation2 + $0xf]] }
 0x6db   : > { %v3840_v61 = vsel %vm651_vm3, %v2221_v48, 0.0  ;;  %vm4090_vm3 = vmmov %vm4089_vm0 }
 0x6dc   : > { %v2229_v62 = vperm.slane %v3840_v61, 0  ;;  %v2225_v63 = vperm.slane %v3840_v61, 1 }
 0x6de   : > { %2174 = vrot.lane.b32.xlu0 %v2157_v43, %s4088_s24  ;;  %2062 = vrot.lane.b32.xlu2 %v2045_v5, %s4088_s24  ;;  %v2186_v26 = vpop.permute.xlu0 %2185  ;;  %v3852_v42 = vpop.permute.xlu1 %2086  ;;  %v2257_v5 = vstv %s3859_s30  ;;  %v2082_v43 = vrot.slane %v2078_v34, 7  ;;  %s3931_s30 = sld [smem:[#allocation2 + $0xc]] }
 0x6df   : > { %2172 = vrot.lane.b32.xlu1 %v2161_v25, %s4088_s24  ;;  %v2190_v0 = vsel %vm4096_vm2, %v2189_v17, %v2186_v26 }
 0x6e0   : > { %v2194_v49 = vrot.slane %v2190_v0, 7 }
 0x6e6   : > { %2198 = vrot.lane.b32.xlu2 %v3778_v27, %s4088_s24  ;;  %2114 = vrot.lane.b32.xlu0 %v2113_v2, %s4087_s23  ;;  %v3854_v31 = vpop.permute.xlu0 %2088 }
 0x6e7   : > { %2200 = vrot.lane.b32.xlu1 %v3769_v39, %s4088_s24 }
 0x6ee   : > { %2118 = vrot.lane.b32.xlu2 %v2117_v52, %s4087_s23  ;;  %2230 = vrot.lane.b32.xlu0 %v2229_v62, %s4087_s23 }
 0x6ef   : > { %2226 = vrot.lane.b32.xlu1 %v2225_v63, %s4087_s23  ;;  %s3889_s23 = sld [smem:[#allocation2 + $0x7]] }
 0x6f6   : > { %2128 = vrot.lane.b32.xlu2 %v2117_v52, %s4088_s24  ;;  %2240 = vrot.lane.b32.xlu0 %v2229_v62, %s4088_s24 }
 0x6f7   : > { %2130 = vrot.lane.b32.xlu1 %v2113_v2, %s4088_s24  ;;  %v2080_v2 = vsel %vm4099_vm11, %v2074_v56, %v2077_v57  ;;  %v2093_v56 = vsel %vm4103_vm13, %v3854_v31, %v3852_v42 }
 0x6f8   : > { %v2083_v62 = vsel %vm2040_vm15, %v2080_v2, %v2082_v43 }
 0x6fe   : > { %2242 = vrot.lane.b32.xlu2 %v2225_v63, %s4088_s24  ;;  %v2192_v63 = vsel %vm4102_vm14, %v2186_v26, %v2189_v17  ;;  %v2281_v26 = vstv %s3889_s23  ;;  %s3916_s24 = sld [smem:[#allocation2 + $0xa]]  ;;  %vm4116_vm14 = vmmov %vm4093_vm1 }
 0x6ff   : > { %v2195_v54 = vsel %vm2040_vm15, %v2192_v63, %v2194_v49 }
 0x730   : > { %v2159_v3 = vpop.permute.xlu2 %2158 }
 0x738   : > { %v2063_v7 = vpop.permute.xlu2 %2062 }
 0x740   : > { %v2051_v44 = vpop.permute.xlu0 %2050  ;;  %v2047_v41 = vpop.permute.xlu1 %2046 }
 0x741   : > { %v2052_v40 = vsel %vm4089_vm0, %v2051_v44, %v2047_v41  ;;  %v2054_v35 = vsel %vm4090_vm3, %v2047_v41, %v2051_v44  ;;  %v3868_v47 = vpop.permute.xlu2 %2198  ;;  %vm4104_vm0 = vmmov %vm4091_vm4 }
 0x742   : > { %v2056_v14 = vrot.slane %v2052_v40, 7  ;;  %vm4105_vm3 = vmmov %vm4094_vm6 }
 0x743   : > { %v2085_v17 = vsel %vm4105_vm3, %v2083_v62, 0.0  ;;  %vm4110_vm2 = vmmov %vm4104_vm0  ;;  %v2313_v62 = vstv %s3931_s30 }
 0x744   : > { %v2057_v50 = vsel %vm2040_vm15, %v2054_v35, %v2056_v14  ;;  %v2295_v35 = vstv %s3874_s2  ;;  %s2564_s2 = sld [smem:[#allocation2 + $0x10]]  ;;  %vm4117_vm13 = vmmov %vm4105_vm3 }
 0x745   : > { %v2059_v1 = vsel %vm4094_vm6, %v2057_v50, 0.0  ;;  %vm4108_vm6 = vmmov %vm4104_vm0 }
 0x746   : > { %v2255_v25 = vmul.f32 %v2254_v33, %v2059_v1 }
 0x748   : > { %v2061_v9 = vpop.permute.xlu0 %2060 }
 0x749   : > { %v2067_v59 = vsel %vm4091_vm4, %v2063_v7, %v2061_v9  ;;  %v2163_v16 = vpop.permute.xlu1 %2162  ;;  %v2064_v19 = vsel %vm4097_vm8, %v2061_v9, %v2063_v7  ;;  %v2119_v57 = vpop.permute.xlu2 %2118  ;;  %v2273_v7 = vstv %s3881_s25  ;;  %v2277_v9 = vstv %s3883_s21  ;;  %vm4106_vm4 = vmmov %vm4100_vm7  ;;  %s2565_s25 = sld [smem:[#allocation2 + $0x11]]  ;;  %s2570_s21 = sshll.u32 %s4124_s22, 6 }
 0x74a   : > { %v2164_v6 = vsel %vm4092_vm5, %v2163_v16, %v2159_v3  ;;  %v2069_v20 = vrot.slane %v2067_v59, 7  ;;  %v2166_v28 = vsel %vm4095_vm9, %v2159_v3, %v2163_v16  ;;  %vm4107_vm5 = vmmov %vm4105_vm3  ;;  %v2095_v16 = vrot.slane %v2093_v56, 7 }
 0x74b   : > { %v2168_v18 = vrot.slane %v2164_v6, 7  ;;  %v2197_v59 = vsel %vm4107_vm5, %v2195_v54, 0.0  ;;  %v2278_v33 = vmul.f32 %v2277_v9, %v2085_v17  ;;  %vm4109_vm9 = vmmov %vm4104_vm0  ;;  %v2317_v56 = vstv %s3936_s0 }
 0x74c   : > { %v2070_v38 = vsel %vm2040_vm15, %v2064_v19, %v2069_v20  ;;  %v2297_v20 = vmul.f32 %v2295_v35, %v3769_v39  ;;  %v2282_v0 = vmul.f32 %v2281_v26, %v2197_v59  ;;  %vm4111_vm8 = vmmov %vm4106_vm4  ;;  %v2325_v17 = vstv %s3948_s19 }
 0x74d   : > { %v2169_v51 = vsel %vm2040_vm15, %v2166_v28, %v2168_v18  ;;  %v2072_v48 = vsel %vm4100_vm7, %v2070_v38, 0.0  ;;  %vm4113_vm11 = vmmov %vm4106_vm4 }
 0x74e   : > { %v2171_v53 = vsel %vm4098_vm12, %v2169_v51, 0.0  ;;  %v2270_v41 = vmul.f32 %v2269_v55, %v2072_v48  ;;  %v2090_v51 = vsel %vm4108_vm6, %v3852_v42, %v3854_v31  ;;  %v2300_v43 = vrot.slane %v2297_v20, 7  ;;  %vm4112_vm12 = vmmov %vm4093_vm1 }
 0x74f   : > { %v2258_v30 = vmul.f32 %v2257_v5, %v2171_v53  ;;  %v2096_v39 = vsel %vm2040_vm15, %v2090_v51, %v2095_v16  ;;  %v2305_v31 = vstv %s3916_s24  ;;  %vm4114_vm7 = vmmov %vm4105_vm3  ;;  %v2329_v51 = vstv %s2564_s2 }
 0x750   : > { %v2175_v4 = vpop.permute.xlu0 %2174  ;;  %vm4118_vm3 = vmmov %vm4104_vm0 }
 0x751   : > { %v2259_v12 = vadd.f32 %v2258_v30, %v2255_v25  ;;  %v2173_v15 = vpop.permute.xlu1 %2172  ;;  %v2098_v30 = vsel %vm4111_vm8, %v2096_v39, 0.0  ;;  %v2129_v49 = vpop.permute.xlu2 %2128  ;;  %vm4120_vm5 = vmmov %vm4104_vm0 }
 0x752   : > { %v2179_v52 = vsel %vm4101_vm10, %v2175_v4, %v2173_v15  ;;  %v2176_v44 = vsel %vm4104_vm0, %v2173_v15, %v2175_v4  ;;  %v2296_v4 = vmul.f32 %v2295_v35, %v3778_v27  ;;  %v2309_v15 = vstv %s3923_s4  ;;  %vm4115_vm10 = vmmov %vm4093_vm1  ;;  %s643_s4 = scalar_lea.vmem %s4012_s20, %s2570_s21 }
 0x753   : > { %v2263_v60 = vadd.f32 %v2262_v8, %v2259_v12  ;;  %v2181_v3 = vrot.slane %v2179_v52, 7  ;;  %v2306_v48 = vmul.f32 %v2305_v31, %v2098_v30 }
 0x754   : > { %v2301_v12 = vsel %vm2040_vm15, %v2296_v4, %v2300_v43 }
 0x755   : > { %v2182_v40 = vsel %vm2040_vm15, %v2176_v44, %v2181_v3  ;;  %v2267_v14 = vadd.f32 %v2266_v11, %v2263_v60 }
 0x756   : > { %v2184_v50 = vsel %vm4106_vm4, %v2182_v40, 0.0  ;;  %v2321_v40 = vstv %s3939_s28  ;;  %vm4119_vm4 = vmmov %vm4104_vm0 }
 0x757   : > { %v2271_v6 = vadd.f32 %v2270_v41, %v2267_v14  ;;  %v2274_v34 = vmul.f32 %v2273_v7, %v2184_v50  ;;  %v2322_v59 = vmul.f32 %v2321_v40, %v3828_v46 }
 0x758   : > { %v2115_v18 = vpop.permute.xlu0 %2114 }
 0x759   : > { %v2275_v1 = vadd.f32 %v2274_v34, %v2271_v6  ;;  %v2201_v5 = vpop.permute.xlu1 %2200  ;;  %v2120_v28 = vsel %vm4093_vm1, %v2119_v57, %v2115_v18  ;;  %v2122_v8 = vsel %vm4112_vm12, %v2115_v18, %v2119_v57  ;;  %v2243_v26 = vpop.permute.xlu2 %2242  ;;  %vm4121_vm1 = vmmov %vm4111_vm8 }
 0x75a   : > { %v2205_v36 = vsel %vm4109_vm9, %v2201_v5, %v3868_v47  ;;  %v2124_v53 = vrot.slane %v2120_v28, 7  ;;  %v2202_v25 = vsel %vm4110_vm2, %v3868_v47, %v2201_v5  ;;  %vm4122_vm6 = vmmov %vm4121_vm1 }
 0x75b   : > { %v2279_v37 = vadd.f32 %v2278_v33, %v2275_v1  ;;  %v2207_v19 = vrot.slane %v2205_v36, 7  ;;  %v2326_v33 = vmul.f32 %v2325_v17, %v3840_v61 }
 0x75c   : > { %v2125_v47 = vsel %vm2040_vm15, %v2122_v8, %v2124_v53 }
 0x75d   : > { %v2283_v38 = vadd.f32 %v2282_v0, %v2279_v37  ;;  %v2208_v42 = vsel %vm2040_vm15, %v2202_v25, %v2207_v19  ;;  %v2333_v37 = vstv %s2565_s25 }
 0x75e   : > { %v2210_v2 = vsel %vm4113_vm11, %v2208_v42, 0.0 }
 0x75f   : > { %v2293_v11 = vadd.f32 %v3776_v58, %v2283_v38  ;;  %v2127_v58 = vsel %vm4114_vm7, %v2125_v47, 0.0  ;;  %v2310_v3 = vmul.f32 %v2309_v15, %v2210_v2 }
 0x760   : > { %v2231_v55 = vpop.permute.xlu0 %2230  ;;  %v2314_v44 = vmul.f32 %v2313_v62, %v2127_v58 }
 0x761   : > { %v2303_v52 = vadd.f32 %v2301_v12, %v2293_v11  ;;  %v2227_v27 = vpop.permute.xlu1 %2226 }
 0x762   : > { %v2232_v63 = vsel %vm4115_vm10, %v2231_v55, %v2227_v27  ;;  %v2234_v57 = vsel %vm4116_vm14, %v2227_v27, %v2231_v55 }
 0x763   : > { %v2307_v60 = vadd.f32 %v2306_v48, %v2303_v52  ;;  %v2236_v54 = vrot.slane %v2232_v63, 7 }
 0x765   : > { %v2311_v7 = vadd.f32 %v2310_v3, %v2307_v60  ;;  %v2237_v41 = vsel %vm2040_vm15, %v2234_v57, %v2236_v54 }
 0x766   : > { %v2239_v14 = vsel %vm4117_vm13, %v2237_v41, 0.0 }
 0x767   : > { %v2315_v35 = vadd.f32 %v2314_v44, %v2311_v7  ;;  %v2318_v9 = vmul.f32 %v2317_v56, %v2239_v14 }
 0x768   : > { %v2241_v50 = vpop.permute.xlu0 %2240 }
 0x769   : > { %v2319_v16 = vadd.f32 %v2318_v9, %v2315_v35  ;;  %v2247_v6 = vsel %vm4104_vm0, %v2243_v26, %v2241_v50  ;;  %v2131_v34 = vpop.permute.xlu1 %2130  ;;  %v2244_v5 = vsel %vm4119_vm4, %v2241_v50, %v2243_v26 }
 0x76a   : > { %v2249_v20 = vrot.slane %v2247_v6, 7  ;;  %v2135_v18 = vsel %vm4118_vm3, %v2131_v34, %v2129_v49  ;;  %v2132_v36 = vsel %vm4120_vm5, %v2129_v49, %v2131_v34 }
 0x76b   : > { %v2323_v1 = vadd.f32 %v2322_v59, %v2319_v16  ;;  %v2137_v28 = vrot.slane %v2135_v18, 7 }
 0x76c   : > { %v2250_v0 = vsel %vm2040_vm15, %v2244_v5, %v2249_v20 }
 0x76d   : > { %v2138_v46 = vsel %vm2040_vm15, %v2132_v36, %v2137_v28  ;;  %v2327_v39 = vadd.f32 %v2326_v33, %v2323_v1  ;;  %v2252_v19 = vsel %vm4121_vm1, %v2250_v0, 0.0 }
 0x76e   : > { %v2140_v53 = vsel %vm4122_vm6, %v2138_v46, 0.0  ;;  %v2334_v43 = vmul.f32 %v2333_v37, %v2252_v19 }
 0x76f   : > { %v2330_v61 = vmul.f32 %v2329_v51, %v2140_v53 }
 0x771   : > { %v2331_v25 = vadd.f32 %v2330_v61, %v2327_v39 }
 0x773   : > { %v2335_v38 = vadd.f32 %v2334_v43, %v2331_v25 }
 0x775   : > { %v2566_v42 = vmul.f32 -1.442695, %v2335_v38 }
 0x777   : > { %2795 = vpow2.f32 %v2566_v42 }
 0x77d   : > { %v2796_v31 = vpop.eup %2795 }
 0x77e   : > { %v2339_v30 = vadd.f32 1.0, %v2796_v31 }
 0x780   : > { %2797 = vrcp.f32 %v2339_v30  ;;  %v2351_v11 = vand.u32 2147483648, %v2339_v30  ;;  %v2349_v12 = vand.u32 2147483647, %v2339_v30  ;;  %vm2345_vm9 = vweird.f32 %v2339_v30 }
 0x782   : > { %v2352_v13 = vor.u32 1.1754944e-38, %v2351_v11  ;;  %vm2350_vm8 = vcmp.eq.f32.partialorder %v2349_v12, 8.507059e+37 }
 0x786   : > { %v2798_v49 = vpop.eup %2797 }
 0x787   : > { %v2341_v4 = vmul.f32 %v2798_v49, %v2339_v30  ;;  %vm2346_vm15 = vweird.f32 %v2798_v49 }
 0x788   : > { %vm2347_vm2 = vmor %vm2345_vm9, %vm2346_vm15 }
 0x789   : > { %v2342_v8 = vsub.f32 1.0, %v2341_v4 }
 0x78b   : > { %v2343_v47 = vmul.f32 %v2798_v49, %v2342_v8 }
 0x78d   : > { %v2344_v15 = vadd.f32 %v2798_v49, %v2343_v47 }
 0x78f   : > { %v2348_v2 = vsel %vm2347_vm2, %v2798_v49, %v2344_v15 }
 0x790   : > { %v2353_v55 = vsel %vm2350_vm8, %v2352_v13, %v2348_v2 }
 0x791   : > { %v2356_v48 = vperm.slane %v2353_v55, 0  ;;  %v2357_v52 = vperm.slane %v2353_v55, 1 }
 0x793   : > { %v2360_v27 = vmul.f32 %v2356_v48, %v3730_v45  ;;  %v2361_v62 = vmul.f32 %v2357_v52, %v3733_v21  ;;  %v2362_v58 = vmul.f32 %v2356_v48, %v3736_v32  ;;  %v2363_v63 = vmul.f32 %v2357_v52, %v3739_v24 }
 0x794   : > { %v2364_v60 = vmul.f32 %v2356_v48, %v3742_v29  ;;  %v2365_v3 = vmul.f32 %v2357_v52, %v3745_v22  ;;  %v2366_v54 = vmul.f32 %v2356_v48, %v3754_v23  ;;  %v2367_v56 = vmul.f32 %v2357_v52, %v3757_v10 }
 0x795   : > { %2368 = vst [vmem:[%s643_s4] sm:$0xff] %v2360_v27 }
 0x796   : > { %2369 = vst [vmem:[%s643_s4 + $0x8] sm:$0xff] %v2361_v62 }
 0x797   : > { %2370 = vst [vmem:[%s643_s4 + $0x10] sm:$0xff] %v2362_v58 }
 0x798   : > { %2371 = vst [vmem:[%s643_s4 + $0x18] sm:$0xff] %v2363_v63 }
 0x799   : > { %2372 = vst [vmem:[%s643_s4 + $0x20] sm:$0xff] %v2364_v60 }
 0x79a   : > { %2373 = vst [vmem:[%s643_s4 + $0x28] sm:$0xff] %v2365_v3 }
 0x79b   : > { %2374 = vst [vmem:[%s643_s4 + $0x30] sm:$0xff] %v2366_v54 }
 0x79c   : > { %2375 = vst [vmem:[%s643_s4 + $0x38] sm:$0xff] %v2367_v56 }
 0x79d PF: > { %s31_s1 = sadd.s32 1, %s2824_s1  }
 0x79e   : > { %p28_p7 = scmp.ge.s32.totalorder %s31_s1, 4  }
 0x7a0   :  { %30 = sbr.rel (!%p28_p7) target bundleno = 8 (0x8), region = 136 }
 0x7a5   :  { %2397 = vsyncpa [#allocation3], 1 }
 0x7a6   :  { %2399 = vsyncpa [#allocation3 + $0x1], 1 }

</bundles_post_ra>
